<compile_context>
chip_gen: v5e
topology: v5e:2x2
jax: 0.10.0
libtpu: 0.0.40
codegen_flags: <defaults>
</compile_context>

<pallas_src>
import jax
import jax.numpy as jnp
from jax.experimental import pallas as pl
from jax.experimental.pallas import tpu as pltpu

# ----------------- config (small, consistent with the module) -----------------
B = 4              # batch size
NUM_NODES = 6
SEQ = 8
HIDDEN = 256       # hidden_size in __init__
NFEAT = 4          # must equal B (quirk of the original .view())
NHID = 8
NHEADS = 2
OUT_CHANNELS = 16
LRELU_ALPHA = 0.2

FOFF = NHEADS * NHID                       # 16: start of the f1/f2 columns
PACK_COLS = NHEADS * NHID + 2 * NHEADS     # 20: [Wh both heads | f1,f2 per head]
GX_DIM = NUM_NODES * NHEADS * NHID         # 96: flattened GAT output per batch
ROW_PROJ_B = HIDDEN                        # 256
ROW_W1 = ROW_PROJ_B + 8                    # 264 (8-row aligned sections)
ROW_B1 = ROW_W1 + GX_DIM                   # 360
PACK_ROWS = ROW_B1 + 8                     # 368


# ------------------------------ fused kernel ----------------------------------
def fused_forward_kernel(x_ref, p_ref, o_ref):
    xv = x_ref[...]                                            # (B, N, S, H)

    # ---- per-node unpad length (batch 0, feature 0 — exactly get_unpad_feat) --
    piece = xv[0, :, :, 0]                                     # (N, S)
    idx = jax.lax.broadcasted_iota(jnp.int32, (NUM_NODES, SEQ), 1)
    nz = (piece != 0.0) & (idx >= 1)                           # index 0 never checked
    j_max = jnp.max(jnp.where(nz, idx, -1), axis=1)            # (N,)
    unpad = jnp.where(j_max >= 0, j_max + 1, SEQ)              # (N,) int32
    inv_len = 1.0 / unpad.astype(jnp.float32)                  # exact reciprocal
    inv_row = jnp.broadcast_to(inv_len[None, :],
                               (B, NUM_NODES)).reshape(B * NUM_NODES, 1)

    # ---- masked mean, mask-free: padded timesteps are exactly zero (that is how
    # the unpad length is derived), so a full-seq sum equals the prefix sum.
    ssum = jnp.sum(xv, axis=2).reshape(B * NUM_NODES, HIDDEN)  # (24, 256)

    # ---- sharelayer + GAT W + attention vectors as ONE folded K=256 MXU dot ---
    proj_w = p_ref[0:HIDDEN, :]                                # (256, 20)
    proj_b = p_ref[ROW_PROJ_B:ROW_PROJ_B + 1, :]               # (1, 20)
    proj = (jnp.dot(ssum, proj_w, preferred_element_type=jnp.float32) * inv_row
            + proj_b)                                          # (24, 20)
    # cols [0:16) = Wh for both heads; cols [16:20) = f1_h0, f2_h0, f1_h1, f2_h1

    # ---- GAT heads -----------------------------------------------------------
    heads = []
    for h in range(NHEADS):                                    # static unroll (2)
        wh = proj[:, h * NHID:(h + 1) * NHID].reshape(B, NUM_NODES, NHID)
        f1 = proj[:, FOFF + 2 * h:FOFF + 2 * h + 1].reshape(B, NUM_NODES, 1)
        f2 = proj[:, FOFF + 2 * h + 1:FOFF + 2 * h + 2].reshape(B, 1, NUM_NODES)
        e = f1 + f2                                            # (B, N, N)
        e = jnp.where(e > 0, e, LRELU_ALPHA * e)               # LeakyReLU(0.2)
        e = e - jnp.max(e, axis=-1, keepdims=True)             # stable softmax
        pexp = jnp.exp(e)
        attn = pexp * pl.reciprocal(jnp.sum(pexp, axis=-1, keepdims=True),
                                    approx=True)
        hp = jnp.einsum("bij,bjd->bid", attn, wh,
                        preferred_element_type=jnp.float32)    # (B, N, NHID)
        heads.append(jnp.where(hp > 0, hp, jnp.exp(hp) - 1.0)) # ELU (concat=True)

    # concat heads then flatten node-major (== torch.flatten(x, 1) element order)
    gx = jnp.concatenate(heads, axis=-1).reshape(B, GX_DIM)    # (B, 96)

    # ---- linear1 + ReLU (the only value forward() returns) --------------------
    w1 = p_ref[ROW_W1:ROW_W1 + GX_DIM, 0:OUT_CHANNELS]         # (96, 16)
    b1 = p_ref[ROW_B1:ROW_B1 + 1, 0:OUT_CHANNELS]              # (1, 16)
    o_ref[...] = jnp.maximum(
        jnp.dot(gx, w1, preferred_element_type=jnp.float32) + b1, 0.0)


# ------------------------------- wrapper --------------------------------------
def prepare_params(p):
    """Fold sharelayer + GAT weights/attention vectors and pack all parameters
    into a single (368, 20) f32 operand (exact algebraic fold, done once)."""
    gw, ga = p["gat_w"], p["gat_a"]                            # (2,4,8), (2,2,8)
    gw_flat = jnp.concatenate([gw[h] for h in range(NHEADS)], axis=1)      # (4,16)
    aproj = jnp.concatenate([gw[h] @ ga[h].T for h in range(NHEADS)], axis=1)  # (4,4)
    comb = jnp.concatenate([gw_flat, aproj], axis=1)           # (4, 20)
    proj_w = p["share_w"] @ comb                               # (256, 20)
    proj_b = p["share_b"] @ comb                               # (1, 20)

    packed = jnp.zeros((PACK_ROWS, PACK_COLS), jnp.float32)
    packed = packed.at[0:HIDDEN, :].set(proj_w)
    packed = packed.at[ROW_PROJ_B, :].set(proj_b[0])
    packed = packed.at[ROW_W1:ROW_W1 + GX_DIM, 0:OUT_CHANNELS].set(p["w1"])
    packed = packed.at[ROW_B1, 0:OUT_CHANNELS].set(p["b1"][0])
    return packed


@jax.jit
def forward(x, packed):
    flops = (2 * B * NUM_NODES * SEQ * HIDDEN                  # seq sum
             + 2 * B * NUM_NODES * HIDDEN * PACK_COLS          # folded projection
             + 2 * NHEADS * B * NUM_NODES * NUM_NODES * NHID   # attn @ Wh
             + 2 * B * GX_DIM * OUT_CHANNELS)                  # linear1
    transcendentals = NHEADS * B * NUM_NODES * (NUM_NODES + NHID)
    bytes_accessed = (x.size + PACK_ROWS * PACK_COLS + B * OUT_CHANNELS) * 4
    return pl.pallas_call(
        fused_forward_kernel,
        out_shape=jax.ShapeDtypeStruct((B, OUT_CHANNELS), jnp.float32),
        in_specs=[pl.BlockSpec(memory_space=pltpu.MemorySpace.VMEM),
                  pl.BlockSpec(memory_space=pltpu.MemorySpace.VMEM)],
        out_specs=pl.BlockSpec(memory_space=pltpu.MemorySpace.VMEM),
        cost_estimate=pl.CostEstimate(flops=flops,
                                      transcendentals=transcendentals,
                                      bytes_accessed=bytes_accessed),
    )(x, packed)


def init_params(key):
    ks = jax.random.split(key, 6)

    def init(k, shape, scale=0.1):
        return jax.random.normal(k, shape, jnp.float32) * scale

    # NOTE: linear2/linear3/layer_out params omitted — that branch is dead code
    # in the original forward (it returns only x).
    return dict(
        share_w=init(ks[0], (HIDDEN, NFEAT)),
        share_b=init(ks[1], (1, NFEAT)),
        gat_w=init(ks[2], (NHEADS, NFEAT, NHID)),
        gat_a=init(ks[3], (NHEADS, 2, NHID)),
        w1=init(ks[4], (GX_DIM, OUT_CHANNELS)),
        b1=init(ks[5], (1, OUT_CHANNELS)),
    )


if __name__ == "__main__":
    key = jax.random.PRNGKey(0)
    kx, kp = jax.random.split(key)
    x = jax.random.normal(kx, (B, NUM_NODES, SEQ, HIDDEN), jnp.float32)
    # zero the trailing timesteps of half the nodes so the unpad logic is exercised
    x = x.at[:, NUM_NODES // 2:, SEQ - 3:, :].set(0.0)
    params = init_params(kp)
    packed = prepare_params(params)
    out = forward(x, packed)
    jax.block_until_ready(out)
    assert out.shape == (B, OUT_CHANNELS) and out.dtype == jnp.float32
    print("KERNEL_OK")
</pallas_src>

<mosaic_0001>
module attributes {stable_mosaic.version = 11 : i64} {
  func.func @fused_forward_kernel(%arg0: memref<4x6x8x256xf32, #tpu.memory_space<vmem>>, %arg1: memref<368x20xf32, #tpu.memory_space<vmem>>, %arg2: memref<4x16xf32, #tpu.memory_space<vmem>>) attributes {dimension_semantics = [], scalar_prefetch = 0 : i64, scratch_operands = 0 : i64, tpu.core_type = #tpu.core_type<tc>} {
    %c0 = arith.constant 0 : index
    %c0_0 = arith.constant 0 : index
    %c0_1 = arith.constant 0 : index
    %c0_2 = arith.constant 0 : index
    %0 = vector.load %arg0[%c0, %c0_0, %c0_1, %c0_2] : memref<4x6x8x256xf32, #tpu.memory_space<vmem>>, vector<4x6x8x256xf32>
    %1 = vector.extract_strided_slice %0 {offsets = [0, 0, 0, 0], sizes = [1, 6, 8, 1], strides = [1, 1, 1, 1]} : vector<4x6x8x256xf32> to vector<1x6x8x1xf32>
    %2 = vector.shape_cast %1 : vector<1x6x8x1xf32> to vector<6x8xf32>
    %3 = tpu.iota {dimensions = array<i32: 1>} : vector<6x8xi32>
    %cst = arith.constant 0.000000e+00 : f32
    %4 = vector.broadcast %cst : f32 to vector<6x8xf32>
    %5 = arith.cmpf one, %2, %4 : vector<6x8xf32>
    %c1_i32 = arith.constant 1 : i32
    %6 = vector.broadcast %c1_i32 : i32 to vector<6x8xi32>
    %7 = arith.cmpi sge, %3, %6 : vector<6x8xi32>
    %8 = arith.andi %5, %7 : vector<6x8xi1>
    %c-1_i32 = arith.constant -1 : i32
    %9 = vector.broadcast %c-1_i32 : i32 to vector<6x8xi32>
    %10 = arith.select %8, %3, %9 : vector<6x8xi1>, vector<6x8xi32>
    %cst_3 = arith.constant dense<-2147483648> : vector<6xi32>
    %11 = vector.multi_reduction <maxsi>, %10, %cst_3 [1] : vector<6x8xi32> to vector<6xi32>
    %c0_i32 = arith.constant 0 : i32
    %12 = vector.broadcast %c0_i32 : i32 to vector<6xi32>
    %13 = arith.cmpi sge, %11, %12 : vector<6xi32>
    %c1_i32_4 = arith.constant 1 : i32
    %14 = vector.broadcast %c1_i32_4 : i32 to vector<6xi32>
    %15 = arith.addi %11, %14 : vector<6xi32>
    %c8_i32 = arith.constant 8 : i32
    %16 = vector.broadcast %c8_i32 : i32 to vector<6xi32>
    %17 = arith.select %13, %15, %16 : vector<6xi1>, vector<6xi32>
    %18 = arith.sitofp %17 : vector<6xi32> to vector<6xf32>
    %cst_5 = arith.constant 1.000000e+00 : f32
    %19 = vector.broadcast %cst_5 : f32 to vector<6xf32>
    %20 = arith.divf %19, %18 : vector<6xf32>
    %21 = vector.shape_cast %20 : vector<6xf32> to vector<1x6xf32>
    %22 = vector.shape_cast %21 : vector<1x6xf32> to vector<1x6xf32>
    %23 = vector.broadcast %22 : vector<1x6xf32> to vector<4x6xf32>
    %24 = vector.shape_cast %23 : vector<4x6xf32> to vector<24x1xf32>
    %cst_6 = arith.constant dense<0.000000e+00> : vector<4x6x256xf32>
    %25 = vector.multi_reduction <add>, %0, %cst_6 [2] : vector<4x6x8x256xf32> to vector<4x6x256xf32>
    %26 = vector.shape_cast %25 : vector<4x6x256xf32> to vector<24x256xf32>
    %c0_7 = arith.constant 0 : index
    %c0_8 = arith.constant 0 : index
    %27 = vector.load %arg1[%c0_7, %c0_8] : memref<368x20xf32, #tpu.memory_space<vmem>>, vector<256x20xf32>
    %c256 = arith.constant 256 : index
    %c0_9 = arith.constant 0 : index
    %28 = vector.load %arg1[%c256, %c0_9] : memref<368x20xf32, #tpu.memory_space<vmem>>, vector<1x20xf32>
    %cst_10 = arith.constant dense<0.000000e+00> : vector<24x20xf32>
    %29 = tpu.matmul %26, %27, %cst_10 {dimension_numbers = #tpu.dot_dimension_numbers<[1], [0], [0], [1], [0, 0, 1, 1], [], []>} : vector<24x256xf32>, vector<256x20xf32>, vector<24x20xf32> -> vector<24x20xf32>
    %30 = vector.broadcast %24 : vector<24x1xf32> to vector<24x20xf32>
    %31 = arith.mulf %29, %30 : vector<24x20xf32>
    %32 = vector.broadcast %28 : vector<1x20xf32> to vector<24x20xf32>
    %33 = arith.addf %31, %32 : vector<24x20xf32>
    %34 = vector.extract_strided_slice %33 {offsets = [0, 0], sizes = [24, 8], strides = [1, 1]} : vector<24x20xf32> to vector<24x8xf32>
    %35 = vector.shape_cast %34 : vector<24x8xf32> to vector<4x6x8xf32>
    %36 = vector.extract_strided_slice %33 {offsets = [0, 16], sizes = [24, 1], strides = [1, 1]} : vector<24x20xf32> to vector<24x1xf32>
    %37 = vector.shape_cast %36 : vector<24x1xf32> to vector<4x6x1xf32>
    %38 = vector.extract_strided_slice %33 {offsets = [0, 17], sizes = [24, 1], strides = [1, 1]} : vector<24x20xf32> to vector<24x1xf32>
    %39 = vector.shape_cast %38 : vector<24x1xf32> to vector<4x1x6xf32>
    %40 = vector.broadcast %37 : vector<4x6x1xf32> to vector<4x6x6xf32>
    %41 = vector.broadcast %39 : vector<4x1x6xf32> to vector<4x6x6xf32>
    %42 = arith.addf %40, %41 : vector<4x6x6xf32>
    %cst_11 = arith.constant 0.000000e+00 : f32
    %43 = vector.broadcast %cst_11 : f32 to vector<4x6x6xf32>
    %44 = arith.cmpf ogt, %42, %43 : vector<4x6x6xf32>
    %cst_12 = arith.constant 2.000000e-01 : f32
    %45 = vector.broadcast %cst_12 : f32 to vector<4x6x6xf32>
    %46 = arith.mulf %45, %42 : vector<4x6x6xf32>
    %47 = arith.select %44, %42, %46 : vector<4x6x6xi1>, vector<4x6x6xf32>
    %cst_13 = arith.constant dense<0xFF800000> : vector<4x6xf32>
    %48 = vector.multi_reduction <maximumf>, %47, %cst_13 [2] : vector<4x6x6xf32> to vector<4x6xf32>
    %49 = vector.shape_cast %48 : vector<4x6xf32> to vector<4x6x1xf32>
    %50 = vector.broadcast %49 : vector<4x6x1xf32> to vector<4x6x6xf32>
    %51 = arith.subf %47, %50 : vector<4x6x6xf32>
    %52 = math.exp %51 : vector<4x6x6xf32>
    %cst_14 = arith.constant dense<0.000000e+00> : vector<4x6xf32>
    %53 = vector.multi_reduction <add>, %52, %cst_14 [2] : vector<4x6x6xf32> to vector<4x6xf32>
    %54 = vector.shape_cast %53 : vector<4x6xf32> to vector<4x6x1xf32>
    %55 = tpu.reciprocal %54 {approx = true} : vector<4x6x1xf32> -> vector<4x6x1xf32>
    %56 = vector.broadcast %55 : vector<4x6x1xf32> to vector<4x6x6xf32>
    %57 = arith.mulf %52, %56 : vector<4x6x6xf32>
    "tpu.trace_start"() <{level = 10 : i32, message = "bij,bjd->bid"}> : () -> ()
    %cst_15 = arith.constant dense<0.000000e+00> : vector<4x6x8xf32>
    %58 = tpu.matmul %57, %35, %cst_15 {dimension_numbers = #tpu.dot_dimension_numbers<[2], [1], [1], [2], [0, 0, 0, 1, 1, 2], [0], [0]>} : vector<4x6x6xf32>, vector<4x6x8xf32>, vector<4x6x8xf32> -> vector<4x6x8xf32>
    %cst_16 = arith.constant 0.000000e+00 : f32
    "tpu.trace_stop"() : () -> ()
    %59 = vector.broadcast %cst_16 : f32 to vector<4x6x8xf32>
    %60 = arith.cmpf ogt, %58, %59 : vector<4x6x8xf32>
    %61 = math.exp %58 : vector<4x6x8xf32>
    %cst_17 = arith.constant 1.000000e+00 : f32
    %62 = vector.broadcast %cst_17 : f32 to vector<4x6x8xf32>
    %63 = arith.subf %61, %62 : vector<4x6x8xf32>
    %64 = arith.select %60, %58, %63 : vector<4x6x8xi1>, vector<4x6x8xf32>
    %65 = vector.extract_strided_slice %33 {offsets = [0, 8], sizes = [24, 8], strides = [1, 1]} : vector<24x20xf32> to vector<24x8xf32>
    %66 = vector.shape_cast %65 : vector<24x8xf32> to vector<4x6x8xf32>
    %67 = vector.extract_strided_slice %33 {offsets = [0, 18], sizes = [24, 1], strides = [1, 1]} : vector<24x20xf32> to vector<24x1xf32>
    %68 = vector.shape_cast %67 : vector<24x1xf32> to vector<4x6x1xf32>
    %69 = vector.extract_strided_slice %33 {offsets = [0, 19], sizes = [24, 1], strides = [1, 1]} : vector<24x20xf32> to vector<24x1xf32>
    %70 = vector.shape_cast %69 : vector<24x1xf32> to vector<4x1x6xf32>
    %71 = vector.broadcast %68 : vector<4x6x1xf32> to vector<4x6x6xf32>
    %72 = vector.broadcast %70 : vector<4x1x6xf32> to vector<4x6x6xf32>
    %73 = arith.addf %71, %72 : vector<4x6x6xf32>
    %cst_18 = arith.constant 0.000000e+00 : f32
    %74 = vector.broadcast %cst_18 : f32 to vector<4x6x6xf32>
    %75 = arith.cmpf ogt, %73, %74 : vector<4x6x6xf32>
    %cst_19 = arith.constant 2.000000e-01 : f32
    %76 = vector.broadcast %cst_19 : f32 to vector<4x6x6xf32>
    %77 = arith.mulf %76, %73 : vector<4x6x6xf32>
    %78 = arith.select %75, %73, %77 : vector<4x6x6xi1>, vector<4x6x6xf32>
    %cst_20 = arith.constant dense<0xFF800000> : vector<4x6xf32>
    %79 = vector.multi_reduction <maximumf>, %78, %cst_20 [2] : vector<4x6x6xf32> to vector<4x6xf32>
    %80 = vector.shape_cast %79 : vector<4x6xf32> to vector<4x6x1xf32>
    %81 = vector.broadcast %80 : vector<4x6x1xf32> to vector<4x6x6xf32>
    %82 = arith.subf %78, %81 : vector<4x6x6xf32>
    %83 = math.exp %82 : vector<4x6x6xf32>
    %cst_21 = arith.constant dense<0.000000e+00> : vector<4x6xf32>
    %84 = vector.multi_reduction <add>, %83, %cst_21 [2] : vector<4x6x6xf32> to vector<4x6xf32>
    %85 = vector.shape_cast %84 : vector<4x6xf32> to vector<4x6x1xf32>
    %86 = tpu.reciprocal %85 {approx = true} : vector<4x6x1xf32> -> vector<4x6x1xf32>
    %87 = vector.broadcast %86 : vector<4x6x1xf32> to vector<4x6x6xf32>
    %88 = arith.mulf %83, %87 : vector<4x6x6xf32>
    "tpu.trace_start"() <{level = 10 : i32, message = "bij,bjd->bid"}> : () -> ()
    %cst_22 = arith.constant dense<0.000000e+00> : vector<4x6x8xf32>
    %89 = tpu.matmul %88, %66, %cst_22 {dimension_numbers = #tpu.dot_dimension_numbers<[2], [1], [1], [2], [0, 0, 0, 1, 1, 2], [0], [0]>} : vector<4x6x6xf32>, vector<4x6x8xf32>, vector<4x6x8xf32> -> vector<4x6x8xf32>
    %cst_23 = arith.constant 0.000000e+00 : f32
    "tpu.trace_stop"() : () -> ()
    %90 = vector.broadcast %cst_23 : f32 to vector<4x6x8xf32>
    %91 = arith.cmpf ogt, %89, %90 : vector<4x6x8xf32>
    %92 = math.exp %89 : vector<4x6x8xf32>
    %cst_24 = arith.constant 1.000000e+00 : f32
    %93 = vector.broadcast %cst_24 : f32 to vector<4x6x8xf32>
    %94 = arith.subf %92, %93 : vector<4x6x8xf32>
    %95 = arith.select %91, %89, %94 : vector<4x6x8xi1>, vector<4x6x8xf32>
    %96 = tpu.concatenate %64, %95 in 2 : vector<4x6x8xf32>, vector<4x6x8xf32> -> vector<4x6x16xf32>
    %97 = vector.shape_cast %96 : vector<4x6x16xf32> to vector<4x96xf32>
    %c264 = arith.constant 264 : index
    %c0_25 = arith.constant 0 : index
    %98 = vector.load %arg1[%c264, %c0_25] : memref<368x20xf32, #tpu.memory_space<vmem>>, vector<96x16xf32>
    %c360 = arith.constant 360 : index
    %c0_26 = arith.constant 0 : index
    %99 = vector.load %arg1[%c360, %c0_26] : memref<368x20xf32, #tpu.memory_space<vmem>>, vector<1x16xf32>
    %cst_27 = arith.constant dense<0.000000e+00> : vector<4x16xf32>
    %100 = tpu.matmul %97, %98, %cst_27 {dimension_numbers = #tpu.dot_dimension_numbers<[1], [0], [0], [1], [0, 0, 1, 1], [], []>} : vector<4x96xf32>, vector<96x16xf32>, vector<4x16xf32> -> vector<4x16xf32>
    %101 = vector.broadcast %99 : vector<1x16xf32> to vector<4x16xf32>
    %102 = arith.addf %100, %101 : vector<4x16xf32>
    %cst_28 = arith.constant 0.000000e+00 : f32
    %103 = vector.broadcast %cst_28 : f32 to vector<4x16xf32>
    %104 = arith.maximumf %102, %103 : vector<4x16xf32>
    %c0_29 = arith.constant 0 : index
    %c0_30 = arith.constant 0 : index
    %105 = vector.load %arg2[%c0_29, %c0_30] : memref<4x16xf32, #tpu.memory_space<vmem>>, vector<4x16xf32>
    tpu.vector_store %arg2[%c0_29, %c0_30], %104 {strides = array<i32>} : memref<4x16xf32, #tpu.memory_space<vmem>>, vector<4x16xf32>,
    return
  }
}

</mosaic_0001>

<bundles_post_ra>
// kernel: forward.1
= control target key start
LH: loop header
LB: loop body
LE: loop exit
PB: predicated region body
PF: predicated region fallthrough
CT: control target
= control target key end

     0   :  { %v60_v0 = vlaneseq  ;;  %v2712_v1 = vmov 0   ;;  %s3861_s0 = inlined_call_operand.vmem [shape: f32[4,6,8,256], index: 0, kind: input, shape index: {}]   ;;  %s3862_s1 = inlined_call_operand.vmem [shape: f32[368,20], index: 1, kind: input, shape index: {}]   ;;  %s3863_s2 = inlined_call_operand.hbm [shape: f32[4,16], index: 2, kind: output, shape index: {}]  }
   0x1   :  { %2575 = vset.pattern.permute.xlu2 %v2712_v1  ;;  %2574 = vset.pattern.permute.xlu1 %v2712_v1 }
   0x2   :  { %7 = vsyncpa [#allocation3], 0  ;;  %v71_v2 = vshrl.u32 %v60_v0, 7  ;;  %v2745_v3 = vand.u32 127, %v60_v0  ;;  %v2752_v6 = vld [vmem:[%s3861_s0 + $0x40] sm:$0xff]  ;;  %v2773_v13 = vld [vmem:[%s3861_s0 + $0x30] sm:$0xff] }
   0x3   :  { %v2757_v7 = vld [vmem:[%s3861_s0 + $0x20] sm:$0xff]  ;;  %vm66_vm2 = vcmp.ne.f32.partialorder %v2752_v6, 0.0  ;;  %v2778_v14 = vld [vmem:[%s3861_s0 + $0x10] sm:$0xff]  ;;  %vm65_vm8 = vcmp.ne.f32.partialorder %v2773_v13, 0.0  ;;  %v480_v19 = vld [vmem:[%s3862_s1 + $0x78] sm:$0xff]  ;;  %vm119_vm14 = vcmask 1041409  }
   0x4   :  { %2573 = vset.pattern.permute.xlu0 %v71_v2  ;;  %vm68_vm0 = vcmp.ge.s32.totalorder %v2745_v3, 1  ;;  %v2762_v8 = vld [vmem:[%s3861_s0] sm:$0xff]  ;;  %vm64_vm3 = vcmp.ne.f32.partialorder %v2757_v7, 0.0  ;;  %vm63_vm9 = vcmp.ne.f32.partialorder %v2778_v14, 0.0  ;;  %v2787_v17 = vld [vmem:[%s3861_s0 + $0x50] sm:$0xff]  ;;  %v496_v20 = vld [vmem:[%s3862_s1 + $0xf8] sm:$0xff]  ;;  %596 = vmatpush.msra.mxu0 %v480_v19 }
   0x5   :  { %v69_v4 = vsel %vm68_vm0, 1, %v2712_v1  ;;  %vm62_vm4 = vcmp.ne.f32.partialorder %v2762_v8, 0.0  ;;  %vm67_vm12 = vcmp.ne.f32.partialorder %v2787_v17, 0.0  ;;  %v479_v21 = vld [vmem:[%s3862_s1 + $0x70] sm:$0xff]  ;;  %622 = vmatpush.msra.mxu1 %v496_v20  ;;  %v478_v23 = vld [vmem:[%s3862_s1 + $0x68] sm:$0xff]  ;;  %v477_v25 = vld [vmem:[%s3862_s1 + $0x60] sm:$0xff] }
   0x6   :  { %v495_v22 = vld [vmem:[%s3862_s1 + $0xf0] sm:$0xff]  ;;  %v494_v24 = vld [vmem:[%s3862_s1 + $0xe8] sm:$0xff]  ;;  %597 = vmatpush.msra.mxu0 %v479_v21  ;;  %v493_v26 = vld [vmem:[%s3862_s1 + $0xe0] sm:$0xff]  ;;  %vm121_vm15 = vcmask 1042434   ;;  %vm123_vm0 = vcmask 1043459   ;;  %v177_v53 = vrot.slane %v2762_v8, 4 }
   0x7   :  { %623 = vmatpush.msra.mxu1 %v495_v22  ;;  %v476_v27 = vld [vmem:[%s3862_s1 + $0x58] sm:$0xff]  ;;  %v475_v31 = vld [vmem:[%s3862_s1 + $0x50] sm:$0xff]  ;;  %v474_v33 = vld [vmem:[%s3862_s1 + $0x48] sm:$0xff]  ;;  %v189_v54 = vrot.slane %v2778_v14, 4  ;;  %v201_v55 = vrot.slane %v2757_v7, 4  ;;  %v213_v56 = vrot.slane %v2773_v13, 4 }
   0x8   :  { %598 = vmatpush.msra.mxu0 %v478_v23  ;;  %v492_v28 = vld [vmem:[%s3862_s1 + $0xd8] sm:$0xff]  ;;  %v491_v32 = vld [vmem:[%s3862_s1 + $0xd0] sm:$0xff]  ;;  %v490_v34 = vld [vmem:[%s3862_s1 + $0xc8] sm:$0xff]  ;;  %v225_v57 = vrot.slane %v2752_v6, 4  ;;  %v178_v58 = vadd.f32 %v177_v53, %v2762_v8  ;;  %s2720_s30 = smov 120   ;;  %s2721_s3 = smov 8  }
   0x9   :  { %624 = vmatpush.msra.mxu1 %v494_v24  ;;  %v190_v59 = vadd.f32 %v189_v54, %v2778_v14  ;;  %v202_v60 = vadd.f32 %v201_v55, %v2757_v7  ;;  %v214_v61 = vadd.f32 %v213_v56, %v2773_v13  ;;  %v473_v24 = vld [vmem:[%s3862_s1 + $0x40] sm:$0xff]  ;;  %v484_v54 = vld [vmem:[%s3862_s1 + $0x98] sm:$0xff]  ;;  %v21_v55 = vld [vmem:[%s3861_s0 + $0x48] sm:$0xff]  ;;  %s2724_s4 = smov 32   ;;  %s2725_s5 = smov 16  }
   0xa   :  { %599 = vmatpush.msra.mxu0 %v477_v25  ;;  %v226_v62 = vadd.f32 %v225_v57, %v2752_v6  ;;  %v179_v63 = vrot.slane %v178_v58, 2  ;;  %v472_v25 = vld [vmem:[%s3862_s1 + $0x38] sm:$0xff]  ;;  %s2726_s6 = smov 48   ;;  %s2727_s7 = smov 80  }
   0xb   :  { %625 = vmatpush.msra.mxu1 %v493_v26  ;;  %v191_v0 = vrot.slane %v190_v59, 2  ;;  %v203_v2 = vrot.slane %v202_v60, 2  ;;  %v23_v56 = vld [vmem:[%s3861_s0 + $0x58] sm:$0xff]  ;;  %s2728_s8 = smov 64   ;;  %s2521_s10 = sshll.u32 %s3863_s2, 4  ;;  %s2522_s10 = int_to_ptr.hbm [resolvable:$true] %s2521_s10 }
   0xc   :  { %74 = vperm.xlu0 %2573, %v69_v4   ;;  %600 = vmatpush.msra.mxu0 %v476_v27  ;;  %v215_v4 = vrot.slane %v214_v61, 2 }
   0xd   :  { %626 = vmatpush.msra.mxu1 %v492_v28  ;;  %v204_v8 = vadd.f32 %v203_v2, %v202_v60 }
   0xe   :  { %601 = vmatpush.msra.mxu0 %v475_v31  ;;  %v471_v31 = vld [vmem:[%s3862_s1 + $0x30] sm:$0xff] }
   0xf   :  { %627 = vmatpush.msra.mxu1 %v491_v32  ;;  %v205_v13 = vrot.slane %v204_v8, 1  ;;  %v487_v32 = vld [vmem:[%s3862_s1 + $0xb0] sm:$0xff] }
  0x10   :  { %602 = vmatpush.msra.mxu0 %v474_v33 }
  0x11   :  { %628 = vmatpush.msra.mxu1 %v490_v34  ;;  %v206_v22 = vadd.f32 %v205_v13, %v204_v8 }
  0x12   :  { %603 = vmatpush.msra.mxu0 %v473_v24 }
  0x14   :  { %87 = vperm.xlu0 %2573, %v2745_v3   ;;  %604 = vmatpush.msra.mxu0 %v472_v25 }
  0x16   :  { %605 = vmatpush.msra.mxu0 %v471_v31  ;;  %v25_v31 = vld [vmem:[%s3861_s0 + $0x68] sm:$0xff] }
  0x1c   :  { %2576 = vset.pattern.permute.xlu0 %v2712_v1  ;;  %v237_v1 = vrot.slane %v2787_v17, 4 }
  0x7e   :  { %v75_v5 = vpop.permute.xlu0 %74 }
  0x7f   :  { %vm76_vm1 = vcmp.ne.s32.totalorder %v75_v5, 0  ;;  %v227_v5 = vrot.slane %v226_v62, 2 }
  0x80   :  { %vm81_vm5 = vmand %vm66_vm2, %vm76_vm1  ;;  %vm127_vm2 = vcmask 1045509  }
  0x81   :  { %vm79_vm6 = vmand %vm64_vm3, %vm76_vm1  ;;  %vm129_vm3 = vcmask 62464   ;;  %v228_v14 = vadd.f32 %v227_v5, %v226_v62 }
  0x82   :  { %vm77_vm7 = vmand %vm62_vm4, %vm76_vm1  ;;  %vm551_vm4 = vcmask 1046534  }
  0x83   :  { %vm80_vm10 = vmand %vm65_vm8, %vm76_vm1  ;;  %v229_v6 = vrot.slane %v228_v14, 1 }
  0x84   :  { %vm78_vm11 = vmand %vm63_vm9, %vm76_vm1 }
  0x85   :  { %vm82_vm13 = vmand %vm67_vm12, %vm76_vm1  ;;  %vm125_vm1 = vcmask 1044484   ;;  %v230_v26 = vadd.f32 %v229_v6, %v228_v14  ;;  %v466_v14 = vld [vmem:[%s3862_s1 + $0x8] sm:$0xff] }
  0x86   :  { %v88_v9 = vpop.permute.xlu0 %87 }
  0x87   :  { %v93_v10 = vsel %vm81_vm5, %v88_v9, 4294967295  ;;  %v91_v11 = vsel %vm79_vm6, %v88_v9, 4294967295  ;;  %v89_v12 = vsel %vm77_vm7, %v88_v9, 4294967295  ;;  %v92_v15 = vsel %vm80_vm10, %v88_v9, 4294967295 }
  0x88   :  { %108 = vperm.xlu0 %2576, %v93_v10   ;;  %102 = vperm.xlu2 %2575, %v91_v11   ;;  %v90_v16 = vsel %vm78_vm11, %v88_v9, 4294967295  ;;  %v94_v18 = vsel %vm82_vm13, %v88_v9, 4294967295  ;;  %v180_v9 = vadd.f32 %v179_v63, %v178_v58  ;;  %v192_v10 = vadd.f32 %v191_v0, %v190_v59  ;;  %v467_v0 = vld [vmem:[%s3862_s1 + $0x10] sm:$0xff] }
  0x89   :  { %96 = vperm.xlu1 %2574, %v89_v12   ;;  %v238_v11 = vadd.f32 %v237_v1, %v2787_v17  ;;  %v216_v12 = vadd.f32 %v215_v4, %v214_v61  ;;  %v489_v17 = vld [vmem:[%s3862_s1 + $0xc0] sm:$0xff]  ;;  %vm553_vm5 = vcmask 1047559   ;;  %v231_v63 = vrot.slane %v21_v55, 4  ;;  %v483_v1 = vld [vmem:[%s3862_s1 + $0x90] sm:$0xff] }
  0x8a   :  { %v193_v7 = vrot.slane %v192_v10, 1  ;;  %629 = vmatpush.msra.mxu1 %v489_v17 }
  0x8c   :  { %v194_v20 = vadd.f32 %v193_v7, %v192_v10 }
  0x90   :  { %105 = vperm.xlu2 %2575, %v92_v15   ;;  %v181_v15 = vrot.slane %v180_v9, 1 }
  0x91   :  { %99 = vperm.xlu1 %2574, %v90_v16   ;;  %v239_v16 = vrot.slane %v238_v11, 2 }
  0x92   :  { %v182_v19 = vadd.f32 %v181_v15, %v180_v9  ;;  %v243_v9 = vrot.slane %v23_v56, 4  ;;  %v482_v15 = vld [vmem:[%s3862_s1 + $0x88] sm:$0xff] }
  0x93   :  { %v240_v21 = vadd.f32 %v239_v16, %v238_v11 }
  0x94   :  { %v546_v28 = vsel %vm119_vm14, %v194_v20, %v182_v19 }
  0x95   :  { %v241_v27 = vrot.slane %v240_v21, 1 }
  0x97   :  { %v242_v33 = vadd.f32 %v241_v27, %v240_v21 }
  0x99   :  { %111 = vperm.xlu1 %2574, %v94_v18   ;;  %v217_v18 = vrot.slane %v216_v12, 1 }
  0x9b   :  { %v218_v23 = vadd.f32 %v217_v18, %v216_v12  ;;  %v232_v12 = vadd.f32 %v231_v63, %v21_v55  ;;  %v244_v18 = vadd.f32 %v243_v9, %v23_v56  ;;  %v34_v55 = vld [vmem:[%s3861_s0 + $0xb0] sm:$0xff] }
  0x9d   :  { %v233_v21 = vrot.slane %v232_v12, 2 }
  0xe2   :  { %v103_v29 = vpop.permute.xlu2 %102 }
  0xe3   :  { %v115_v38 = vperm.slane %v103_v29, %v2745_v3  ;;  %v488_v29 = vld [vmem:[%s3862_s1 + $0xb8] sm:$0xff] }
  0xe4   :  { %630 = vmatpush.msra.mxu1 %v488_v29 }
  0xe6   :  { %631 = vmatpush.msra.mxu1 %v487_v32  ;;  %v27_v32 = vld [vmem:[%s3861_s0 + $0x78] sm:$0xff] }
  0xea   :  { %v106_v39 = vpop.permute.xlu2 %105 }
  0xeb   :  { %v116_v42 = vperm.slane %v106_v39, %v2745_v3 }
  0xfa   :  { %v109_v43 = vpop.permute.xlu0 %108 }
  0xfb   :  { %v97_v30 = vpop.permute.xlu1 %96  ;;  %v117_v45 = vperm.slane %v109_v43, %v2745_v3  ;;  %v24_v43 = vld [vmem:[%s3861_s0 + $0x60] sm:$0xff] }
  0xfc   :  { %v113_v36 = vperm.slane %v97_v30, %v2745_v3  ;;  %v547_v30 = vsel %vm121_vm15, %v206_v22, %v546_v28  ;;  %v465_v22 = vld [vmem:[%s3862_s1] sm:$0xff] }
  0xfd   :  { %v548_v34 = vsel %vm123_vm0, %v218_v23, %v547_v30  ;;  %v481_v23 = vld [vmem:[%s3862_s1 + $0x80] sm:$0xff]  ;;  %v234_v30 = vadd.f32 %v233_v21, %v232_v12 }
 0x103   :  { %v100_v35 = vpop.permute.xlu1 %99 }
 0x104   :  { %v114_v37 = vperm.slane %v100_v35, %v2745_v3  ;;  %v549_v35 = vsel %vm125_vm1, %v230_v26, %v548_v34  ;;  %v245_v26 = vrot.slane %v244_v18, 2 }
 0x105   :  { %v2892_v39 = vsel %vm127_vm2, %v242_v33, %v549_v35 }
 0x106   :  { %v120_v40 = vsel %vm119_vm14, %v114_v37, %v113_v36  ;;  %v470_v37 = vld [vmem:[%s3862_s1 + $0x28] sm:$0xff] }
 0x107   :  { %v122_v41 = vsel %vm121_vm15, %v115_v38, %v120_v40  ;;  %v486_v38 = vld [vmem:[%s3862_s1 + $0xa8] sm:$0xff]  ;;  %v469_v40 = vld [vmem:[%s3862_s1 + $0x20] sm:$0xff]  ;;  %606 = vmatpush.msra.mxu0 %v470_v37 }
 0x108   :  { %v124_v44 = vsel %vm123_vm0, %v116_v42, %v122_v41  ;;  %v485_v41 = vld [vmem:[%s3862_s1 + $0xa0] sm:$0xff]  ;;  %v468_v42 = vld [vmem:[%s3862_s1 + $0x18] sm:$0xff]  ;;  %632 = vmatpush.msra.mxu1 %v486_v38 }
 0x109   :  { %v126_v48 = vsel %vm125_vm1, %v117_v45, %v124_v44  ;;  %v26_v44 = vld [vmem:[%s3861_s0 + $0x70] sm:$0xff]  ;;  %v13_v45 = vld [vmem:[%s3861_s0 + $0x8] sm:$0xff]  ;;  %607 = vmatpush.msra.mxu0 %v469_v40 }
 0x10a   :  { %633 = vmatpush.msra.mxu1 %v485_v41  ;;  %v235_v41 = vrot.slane %v234_v30, 1 }
 0x10b   :  { %v112_v46 = vpop.permute.xlu1 %111  ;;  %608 = vmatpush.msra.mxu0 %v468_v42  ;;  %v28_v42 = vld [vmem:[%s3861_s0 + $0x80] sm:$0xff] }
 0x10c   :  { %v118_v47 = vperm.slane %v112_v46, %v2745_v3  ;;  %v249_v46 = vrot.slane %v24_v43, 4  ;;  %634 = vmatpush.msra.mxu1 %v484_v54  ;;  %v32_v54 = vld [vmem:[%s3861_s0 + $0xa0] sm:$0xff] }
 0x10d   :  { %609 = vmatpush.msra.mxu0 %v467_v0  ;;  %v36_v0 = vld [vmem:[%s3861_s0 + $0xc0] sm:$0xff] }
 0x10e   :  { %v128_v49 = vsel %vm127_vm2, %v118_v47, %v126_v48  ;;  %v261_v47 = vrot.slane %v26_v44, 4  ;;  %v15_v48 = vld [vmem:[%s3861_s0 + $0x18] sm:$0xff]  ;;  %v250_v60 = vadd.f32 %v249_v46, %v24_v43  ;;  %635 = vmatpush.msra.mxu1 %v483_v1 }
 0x10f   :  { %v2844_v50 = vsel %vm129_vm3, %v128_v49, 2147483648  ;;  %v17_v49 = vld [vmem:[%s3861_s0 + $0x28] sm:$0xff]  ;;  %v195_v57 = vrot.slane %v15_v48, 4  ;;  %610 = vmatpush.msra.mxu0 %v466_v14 }
 0x110   :  { %v132_v51 = vshra.s32 %v2844_v50, 16  ;;  %v131_v36 = vand.u32 65535, %v2844_v50  ;;  %v19_v50 = vld [vmem:[%s3861_s0 + $0x38] sm:$0xff]  ;;  %v207_v58 = vrot.slane %v17_v49, 4  ;;  %v262_v61 = vadd.f32 %v261_v47, %v26_v44  ;;  %636 = vmatpush.msra.mxu1 %v482_v15  ;;  %v30_v47 = vld [vmem:[%s3861_s0 + $0x90] sm:$0xff] }
 0x111   :  { %v219_v59 = vrot.slane %v19_v50, 4  ;;  %v196_v2 = vadd.f32 %v195_v57, %v15_v48  ;;  %v251_v10 = vrot.slane %v250_v60, 2  ;;  %611 = vmatpush.msra.mxu0 %v465_v22 }
 0x112   :  { %v2847_v52 = vcvt.s32.f32 %v132_v51  ;;  %v183_v51 = vrot.slane %v13_v45, 4  ;;  %v2921_v53 = vcvt.s32.f32 %v131_v36  ;;  %v208_v4 = vadd.f32 %v207_v58, %v17_v49  ;;  %637 = vmatpush.msra.mxu1 %v481_v23 }
 0x113   :  { %v220_v5 = vadd.f32 %v219_v59, %v19_v50  ;;  %v263_v11 = vrot.slane %v262_v61, 2  ;;  %v197_v7 = vrot.slane %v196_v2, 2  ;;  %v252_v6 = vadd.f32 %v251_v10, %v250_v60 }
 0x114   :  { %135 = vmax.xlane.f32.xlu2 %v2847_v52  ;;  %v184_v62 = vadd.f32 %v183_v51, %v13_v45  ;;  %v209_v16 = vrot.slane %v208_v4, 2  ;;  %v246_v36 = vadd.f32 %v245_v26, %v244_v18  ;;  %v236_v49 = vadd.f32 %v235_v41, %v234_v30 }
 0x115   :  { %v221_v13 = vrot.slane %v220_v5, 2  ;;  %v264_v19 = vadd.f32 %v263_v11, %v262_v61  ;;  %v198_v24 = vadd.f32 %v197_v7, %v196_v2  ;;  %v253_v27 = vrot.slane %v252_v6, 1  ;;  %v38_v11 = vld [vmem:[%s3861_s0 + $0xd0] sm:$0xff] }
 0x116   :  { %v185_v8 = vrot.slane %v184_v62, 2  ;;  %v210_v17 = vadd.f32 %v209_v16, %v208_v4  ;;  %v247_v46 = vrot.slane %v246_v36, 1  ;;  %v255_v50 = vrot.slane %v25_v31, 4 }
 0x117   :  { %v222_v25 = vadd.f32 %v221_v13, %v220_v5  ;;  %v265_v28 = vrot.slane %v264_v19, 1  ;;  %v199_v33 = vrot.slane %v198_v24, 1  ;;  %v254_v37 = vadd.f32 %v253_v27, %v252_v6 }
 0x118   :  { %v186_v20 = vadd.f32 %v185_v8, %v184_v62  ;;  %v211_v34 = vrot.slane %v210_v17, 1  ;;  %v267_v51 = vrot.slane %v27_v32, 4  ;;  %v248_v57 = vadd.f32 %v247_v46, %v246_v36  ;;  %v42_v36 = vld [vmem:[%s3861_s0 + $0xf0] sm:$0xff] }
 0x119   :  { %v223_v35 = vrot.slane %v222_v25, 1  ;;  %v266_v38 = vadd.f32 %v265_v28, %v264_v19  ;;  %v200_v43 = vadd.f32 %v199_v33, %v198_v24  ;;  %v552_v48 = vsel %vm551_vm4, %v254_v37, %v2892_v39 }
 0x11a   :  { %v187_v29 = vrot.slane %v186_v20, 1  ;;  %v212_v44 = vadd.f32 %v211_v34, %v210_v17  ;;  %v273_v59 = vrot.slane %v28_v42, 4  ;;  %v256_v60 = vadd.f32 %v255_v50, %v25_v31 }
 0x11b   :  { %v224_v45 = vadd.f32 %v223_v35, %v222_v25  ;;  %v554_v56 = vsel %vm553_vm5, %v266_v38, %v552_v48  ;;  %v268_v39 = vadd.f32 %v267_v51, %v27_v32  ;;  %v285_v62 = vrot.slane %v30_v47, 4  ;;  %v40_v35 = vld [vmem:[%s3861_s0 + $0xe0] sm:$0xff] }
 0x11c   :  { %v188_v40 = vadd.f32 %v187_v29, %v186_v20  ;;  %612 = vmatmul.f32.vlgmr.msra.gmra.mxu0 %v554_v56  ;;  %v274_v1 = vadd.f32 %v273_v59, %v28_v42  ;;  %v297_v2 = vrot.slane %v32_v54, 4  ;;  %v309_v4 = vrot.slane %v34_v55, 4 }
 0x11d   :  { %v257_v5 = vrot.slane %v256_v60, 2  ;;  %v269_v9 = vrot.slane %v268_v39, 2  ;;  %v286_v8 = vadd.f32 %v285_v62, %v30_v47  ;;  %v321_v6 = vrot.slane %v36_v0, 4 }
 0x11e   :  { %v555_v58 = vsel %vm119_vm14, %v200_v43, %v188_v40  ;;  %v275_v14 = vrot.slane %v274_v1, 2  ;;  %v298_v15 = vadd.f32 %v297_v2, %v32_v54  ;;  %v310_v7 = vadd.f32 %v309_v4, %v34_v55  ;;  %v33_v55 = vld [vmem:[%s3861_s0 + $0xa8] sm:$0xff] }
 0x11f   :  { %v556_v61 = vsel %vm121_vm15, %v212_v44, %v555_v58  ;;  %v258_v16 = vadd.f32 %v257_v5, %v256_v60  ;;  %v270_v13 = vadd.f32 %v269_v9, %v268_v39  ;;  %v287_v18 = vrot.slane %v286_v8, 2  ;;  %v31_v44 = vld [vmem:[%s3861_s0 + $0x98] sm:$0xff]  ;;  %v37_v9 = vld [vmem:[%s3861_s0 + $0xc8] sm:$0xff] }
 0x120   :  { %v557_v63 = vsel %vm123_vm0, %v224_v45, %v556_v61  ;;  %v276_v19 = vadd.f32 %v275_v14, %v274_v1  ;;  %v299_v20 = vrot.slane %v298_v15, 2  ;;  %v311_v21 = vrot.slane %v310_v7, 2  ;;  %v35_v61 = vld [vmem:[%s3861_s0 + $0xb8] sm:$0xff] }
 0x121   :  { %v558_v10 = vsel %vm125_vm1, %v236_v49, %v557_v63  ;;  %v333_v22 = vrot.slane %v38_v11, 4  ;;  %v259_v23 = vrot.slane %v258_v16, 1  ;;  %v271_v24 = vrot.slane %v270_v13, 1 }
 0x122   :  { %v559_v12 = vsel %vm127_vm2, %v248_v57, %v558_v10  ;;  %v288_v17 = vadd.f32 %v287_v18, %v286_v8  ;;  %v322_v25 = vadd.f32 %v321_v6, %v36_v0  ;;  %v277_v26 = vrot.slane %v276_v19, 1  ;;  %v39_v18 = vld [vmem:[%s3861_s0 + $0xd8] sm:$0xff] }
 0x123   :  { %v300_v27 = vadd.f32 %v299_v20, %v298_v15  ;;  %v312_v28 = vadd.f32 %v311_v21, %v310_v7  ;;  %v334_v29 = vadd.f32 %v333_v22, %v38_v11  ;;  %v260_v31 = vadd.f32 %v259_v23, %v258_v16 }
 0x124   :  { %v272_v32 = vadd.f32 %v271_v24, %v270_v13  ;;  %v289_v33 = vrot.slane %v288_v17, 1  ;;  %v323_v34 = vrot.slane %v322_v25, 2  ;;  %v278_v37 = vadd.f32 %v277_v26, %v276_v19 }
 0x125   :  { %v301_v38 = vrot.slane %v300_v27, 1  ;;  %v560_v41 = vsel %vm551_vm4, %v260_v31, %v559_v12  ;;  %v313_v43 = vrot.slane %v312_v28, 1  ;;  %v345_v49 = vrot.slane %v40_v35, 4 }
 0x126   :  { %v290_v42 = vadd.f32 %v289_v33, %v288_v17  ;;  %v561_v45 = vsel %vm553_vm5, %v272_v32, %v560_v41  ;;  %v324_v47 = vadd.f32 %v323_v34, %v322_v25  ;;  %v357_v50 = vrot.slane %v42_v36, 4  ;;  %v41_v25 = vld [vmem:[%s3861_s0 + $0xe8] sm:$0xff]  ;;  %v43_v33 = vld [vmem:[%s3861_s0 + $0xf8] sm:$0xff] }
 0x127   :  { %v302_v46 = vadd.f32 %v301_v38, %v300_v27  ;;  %638 = vmatmul.f32.vlgmr.msra.gmra.mxu1 %v561_v45  ;;  %v314_v48 = vadd.f32 %v313_v43, %v312_v28  ;;  %v291_v57 = vrot.slane %v31_v44, 4  ;;  %v346_v59 = vadd.f32 %v345_v49, %v40_v35 }
 0x128   :  { %v325_v51 = vrot.slane %v324_v47, 1  ;;  %v562_v54 = vsel %vm119_vm14, %v290_v42, %v278_v37  ;;  %v358_v60 = vadd.f32 %v357_v50, %v42_v36  ;;  %v303_v10 = vrot.slane %v33_v55, 4 }
 0x129   :  { %v563_v39 = vsel %vm121_vm15, %v302_v46, %v562_v54  ;;  %v292_v1 = vadd.f32 %v291_v57, %v31_v44  ;;  %v347_v4 = vrot.slane %v346_v59, 2  ;;  %v315_v14 = vrot.slane %v35_v61, 4  ;;  %v44_v44 = vld [vmem:[%s3861_s0 + $0x100] sm:$0xff] }
 0x12a   :  { %v326_v62 = vadd.f32 %v325_v51, %v324_v47  ;;  %v564_v63 = vsel %vm123_vm0, %v314_v48, %v563_v39  ;;  %v359_v5 = vrot.slane %v358_v60, 2  ;;  %v304_v13 = vadd.f32 %v303_v10, %v33_v55  ;;  %v52_v10 = vld [vmem:[%s3861_s0 + $0x140] sm:$0xff] }
 0x12b   :  { %v293_v12 = vrot.slane %v292_v1, 2  ;;  %v348_v7 = vadd.f32 %v347_v4, %v346_v59  ;;  %v316_v20 = vadd.f32 %v315_v14, %v35_v61  ;;  %v327_v21 = vrot.slane %v37_v9, 4 }
 0x12c   :  { %v565_v11 = vsel %vm125_vm1, %v326_v62, %v564_v63  ;;  %v360_v16 = vadd.f32 %v359_v5, %v358_v60  ;;  %v305_v17 = vrot.slane %v304_v13, 2  ;;  %v339_v35 = vrot.slane %v39_v18, 4  ;;  %v50_v62 = vld [vmem:[%s3861_s0 + $0x130] sm:$0xff] }
 0x12d   :  { %v294_v19 = vadd.f32 %v293_v12, %v292_v1  ;;  %v349_v22 = vrot.slane %v348_v7, 1  ;;  %v317_v28 = vrot.slane %v316_v20, 2  ;;  %v363_v48 = vrot.slane %v43_v33, 4 }
 0x12e   :  { %v361_v23 = vrot.slane %v360_v16, 1  ;;  %v306_v34 = vadd.f32 %v305_v17, %v304_v13  ;;  %v340_v43 = vadd.f32 %v339_v35, %v39_v18  ;;  %v369_v59 = vrot.slane %v44_v44, 4 }
 0x12f   :  { %v295_v27 = vrot.slane %v294_v19, 1  ;;  %v350_v31 = vadd.f32 %v349_v22, %v348_v7  ;;  %v318_v38 = vadd.f32 %v317_v28, %v316_v20  ;;  %v364_v57 = vadd.f32 %v363_v48, %v43_v33  ;;  %v54_v20 = vld [vmem:[%s3861_s0 + $0x150] sm:$0xff]  ;;  %v56_v28 = vld [vmem:[%s3861_s0 + $0x160] sm:$0xff] }
 0x130   :  { %v362_v32 = vadd.f32 %v361_v23, %v360_v16  ;;  %v307_v42 = vrot.slane %v306_v34, 1  ;;  %v341_v50 = vrot.slane %v340_v43, 2  ;;  %v370_v4 = vadd.f32 %v369_v59, %v44_v44 }
 0x131   :  { %v296_v37 = vadd.f32 %v295_v27, %v294_v19  ;;  %v319_v46 = vrot.slane %v318_v38, 1  ;;  %v365_v1 = vrot.slane %v364_v57, 2  ;;  %v405_v7 = vrot.slane %v50_v62, 4 }
 0x132   :  { %v308_v49 = vadd.f32 %v307_v42, %v306_v34  ;;  %v342_v60 = vadd.f32 %v341_v50, %v340_v43  ;;  %v417_v23 = vrot.slane %v52_v10, 4  ;;  %v58_v34 = vld [vmem:[%s3861_s0 + $0x170] sm:$0xff] }
 0x133   :  { %v320_v55 = vadd.f32 %v319_v46, %v318_v38  ;;  %v366_v12 = vadd.f32 %v365_v1, %v364_v57  ;;  %v406_v22 = vadd.f32 %v405_v7, %v50_v62  ;;  %v45_v38 = vld [vmem:[%s3861_s0 + $0x108] sm:$0xff]  ;;  %v441_v46 = vrot.slane %v56_v28, 4 }
 0x134   :  { %v343_v5 = vrot.slane %v342_v60, 1  ;;  %v375_v50 = vrot.slane %v45_v38, 4 }
 0x135   :  { %v367_v19 = vrot.slane %v366_v12, 1 }
 0x136   :  { %v344_v16 = vadd.f32 %v343_v5, %v342_v60  ;;  %v49_v60 = vld [vmem:[%s3861_s0 + $0x128] sm:$0xff] }
 0x137   :  { %v368_v27 = vadd.f32 %v367_v19, %v366_v12 }
 0x187   :  { %v2982_v30 = vpop.xlane.xlu2 %135 }
 0x188   :  { %vm137_vm6 = vcmp.eq.f32.partialorder %v2847_v52, %v2982_v30  ;;  %v29_v52 = vld [vmem:[%s3861_s0 + $0x88] sm:$0xff] }
 0x189   :  { %v138_v40 = vsel %vm137_vm6, %v2921_v53, -inf  ;;  %v335_v53 = vrot.slane %v334_v29, 2  ;;  %v279_v56 = vrot.slane %v29_v52, 4 }
 0x18a   :  { %139 = vmax.xlane.f32.xlu1 %v138_v40 }
 0x18b   :  { %v336_v58 = vadd.f32 %v335_v53, %v334_v29  ;;  %v280_v0 = vadd.f32 %v279_v56, %v29_v52  ;;  %v328_v29 = vadd.f32 %v327_v21, %v37_v9  ;;  %v351_v52 = vrot.slane %v41_v25, 4  ;;  %v46_v53 = vld [vmem:[%s3861_s0 + $0x110] sm:$0xff] }
 0x18c   :  { %v381_v63 = vrot.slane %v46_v53, 4 }
 0x18d   :  { %v337_v2 = vrot.slane %v336_v58, 1  ;;  %v281_v8 = vrot.slane %v280_v0, 2  ;;  %v329_v40 = vrot.slane %v328_v29, 2  ;;  %v352_v51 = vadd.f32 %v351_v52, %v41_v25 }
 0x18f   :  { %v338_v15 = vadd.f32 %v337_v2, %v336_v58  ;;  %v282_v6 = vadd.f32 %v281_v8, %v280_v0  ;;  %v330_v47 = vadd.f32 %v329_v40, %v328_v29  ;;  %v48_v58 = vld [vmem:[%s3861_s0 + $0x120] sm:$0xff]  ;;  %v353_v39 = vrot.slane %v352_v51, 2 }
 0x190   :  { %v393_v8 = vrot.slane %v48_v58, 4 }
 0x191   :  { %v566_v24 = vsel %vm127_vm2, %v338_v15, %v565_v11  ;;  %v283_v26 = vrot.slane %v282_v6, 1  ;;  %v331_v56 = vrot.slane %v330_v47, 1  ;;  %v354_v9 = vadd.f32 %v353_v39, %v352_v51 }
 0x192   :  { %v567_v41 = vsel %vm551_vm4, %v350_v31, %v566_v24  ;;  %v382_v11 = vadd.f32 %v381_v63, %v46_v53  ;;  %v371_v15 = vrot.slane %v370_v4, 2  ;;  %v407_v31 = vrot.slane %v406_v22, 2 }
 0x193   :  { %v284_v36 = vadd.f32 %v283_v26, %v282_v6  ;;  %v568_v45 = vsel %vm553_vm5, %v362_v32, %v567_v41  ;;  %v332_v0 = vadd.f32 %v331_v56, %v330_v47  ;;  %v355_v13 = vrot.slane %v354_v9, 1 }
 0x194   :  { %615 = vmatmul.f32.gmra.mxu0 %v568_v45  ;;  %v383_v18 = vrot.slane %v382_v11, 2  ;;  %v394_v6 = vadd.f32 %v393_v8, %v48_v58  ;;  %v372_v21 = vadd.f32 %v371_v15, %v370_v4  ;;  %v418_v32 = vadd.f32 %v417_v23, %v52_v10  ;;  %v53_v8 = vld [vmem:[%s3861_s0 + $0x148] sm:$0xff] }
 0x195   :  { %v569_v54 = vsel %vm119_vm14, %v296_v37, %v284_v36  ;;  %v356_v24 = vadd.f32 %v355_v13, %v354_v9  ;;  %v429_v37 = vrot.slane %v54_v20, 4  ;;  %v408_v42 = vadd.f32 %v407_v31, %v406_v22  ;;  %v55_v22 = vld [vmem:[%s3861_s0 + $0x158] sm:$0xff] }
 0x196   :  { %v570_v61 = vsel %vm121_vm15, %v308_v49, %v569_v54  ;;  %v384_v25 = vadd.f32 %v383_v18, %v382_v11  ;;  %v395_v26 = vrot.slane %v394_v6, 2  ;;  %v373_v29 = vrot.slane %v372_v21, 1  ;;  %v47_v49 = vld [vmem:[%s3861_s0 + $0x118] sm:$0xff] }
 0x197   :  { %v571_v2 = vsel %vm123_vm0, %v320_v55, %v570_v61  ;;  %v419_v43 = vrot.slane %v418_v32, 2  ;;  %v430_v45 = vadd.f32 %v429_v37, %v54_v20  ;;  %v409_v47 = vrot.slane %v408_v42, 1 }
 0x198   :  { %v572_v14 = vsel %vm125_vm1, %v332_v0, %v571_v2  ;;  %v385_v35 = vrot.slane %v384_v25, 1  ;;  %v396_v36 = vadd.f32 %v395_v26, %v394_v6  ;;  %v374_v41 = vadd.f32 %v373_v29, %v372_v21  ;;  %v51_v0 = vld [vmem:[%s3861_s0 + $0x138] sm:$0xff] }
 0x199   :  { %v573_v17 = vsel %vm127_vm2, %v344_v16, %v572_v14  ;;  %v420_v48 = vadd.f32 %v419_v43, %v418_v32  ;;  %v453_v53 = vrot.slane %v58_v34, 4  ;;  %v431_v54 = vrot.slane %v430_v45, 2  ;;  %v59_v32 = vld [vmem:[%s3861_s0 + $0x178] sm:$0xff] }
 0x19a   :  { %v574_v33 = vsel %vm551_vm4, %v356_v24, %v573_v17  ;;  %v386_v52 = vadd.f32 %v385_v35, %v384_v25  ;;  %v397_v44 = vrot.slane %v396_v36, 1  ;;  %v442_v55 = vadd.f32 %v441_v46, %v56_v28 }
 0x19b   :  { %v575_v40 = vsel %vm553_vm5, %v368_v27, %v574_v33  ;;  %v410_v57 = vadd.f32 %v409_v47, %v408_v42  ;;  %v421_v58 = vrot.slane %v420_v48, 1  ;;  %v454_v59 = vadd.f32 %v453_v53, %v58_v34  ;;  %v57_v27 = vld [vmem:[%s3861_s0 + $0x168] sm:$0xff] }
 0x19c   :  { %641 = vmatmul.f32.gmra.mxu1 %v575_v40  ;;  %v398_v51 = vadd.f32 %v397_v44, %v396_v36  ;;  %v576_v56 = vsel %vm119_vm14, %v386_v52, %v374_v41  ;;  %v376_v39 = vadd.f32 %v375_v50, %v45_v38  ;;  %v432_v61 = vadd.f32 %v431_v54, %v430_v45 }
 0x19d   :  { %v443_v62 = vrot.slane %v442_v55, 2  ;;  %v387_v1 = vrot.slane %v47_v49, 4  ;;  %v422_v2 = vadd.f32 %v421_v58, %v420_v48  ;;  %v455_v4 = vrot.slane %v454_v59, 2 }
 0x19e   :  { %v577_v63 = vsel %vm121_vm15, %v398_v51, %v576_v56  ;;  %v377_v9 = vrot.slane %v376_v39, 2  ;;  %v433_v10 = vrot.slane %v432_v61, 1  ;;  %v399_v14 = vrot.slane %v49_v60, 4 }
 0x19f   :  { %v578_v5 = vsel %vm123_vm0, %v410_v57, %v577_v63  ;;  %v444_v11 = vadd.f32 %v443_v62, %v442_v55  ;;  %v388_v12 = vadd.f32 %v387_v1, %v47_v49  ;;  %v456_v15 = vadd.f32 %v455_v4, %v454_v59 }
 0x1a0   :  { %v579_v7 = vsel %vm125_vm1, %v422_v2, %v578_v5  ;;  %v378_v16 = vadd.f32 %v377_v9, %v376_v39  ;;  %v411_v13 = vrot.slane %v51_v0, 4  ;;  %v434_v18 = vadd.f32 %v433_v10, %v432_v61 }
 0x1a1   :  { %v445_v6 = vrot.slane %v444_v11, 1  ;;  %v389_v19 = vrot.slane %v388_v12, 2  ;;  %v400_v20 = vadd.f32 %v399_v14, %v49_v60  ;;  %v457_v21 = vrot.slane %v456_v15, 1 }
 0x1a2   :  { %v379_v23 = vrot.slane %v378_v16, 1  ;;  %v412_v24 = vadd.f32 %v411_v13, %v51_v0  ;;  %v423_v17 = vrot.slane %v53_v8, 4  ;;  %v580_v26 = vsel %vm127_vm2, %v434_v18, %v579_v7 }
 0x1a3   :  { %v446_v25 = vadd.f32 %v445_v6, %v444_v11  ;;  %v390_v28 = vadd.f32 %v389_v19, %v388_v12  ;;  %v401_v29 = vrot.slane %v400_v20, 2  ;;  %v458_v31 = vadd.f32 %v457_v21, %v456_v15 }
 0x1a4   :  { %v380_v33 = vadd.f32 %v379_v23, %v378_v16  ;;  %v413_v34 = vrot.slane %v412_v24, 2  ;;  %v424_v35 = vadd.f32 %v423_v17, %v53_v8  ;;  %v435_v40 = vrot.slane %v55_v22, 4 }
 0x1a5   :  { %v581_v36 = vsel %vm551_vm4, %v446_v25, %v580_v26  ;;  %v391_v37 = vrot.slane %v390_v28, 1  ;;  %v402_v38 = vadd.f32 %v401_v29, %v400_v20  ;;  %v447_v52 = vrot.slane %v57_v27, 4 }
 0x1a6   :  { %v582_v41 = vsel %vm553_vm5, %v458_v31, %v581_v36  ;;  %v414_v42 = vadd.f32 %v413_v34, %v412_v24  ;;  %v425_v43 = vrot.slane %v424_v35, 2  ;;  %v436_v46 = vadd.f32 %v435_v40, %v55_v22 }
 0x1a7   :  { %618 = vmatmul.f32.gmra.mxu0 %v582_v41  ;;  %v392_v44 = vadd.f32 %v391_v37, %v390_v28  ;;  %v403_v45 = vrot.slane %v402_v38, 1  ;;  %v459_v47 = vrot.slane %v59_v32, 4  ;;  %v448_v49 = vadd.f32 %v447_v52, %v57_v27  ;;  %v639_v52 = vpop.f32.mrf.mxu1 }
 0x1a8   :  { %v415_v48 = vrot.slane %v414_v42, 1  ;;  %v426_v53 = vadd.f32 %v425_v43, %v424_v35  ;;  %v437_v51 = vrot.slane %v436_v46, 2  ;;  %v142_v15 = vcvt.f32.s32 %v2982_v30  ;;  %v613_v43 = vpop.f32.mrf.mxu0 }
 0x1a9   :  { %v404_v50 = vadd.f32 %v403_v45, %v402_v38  ;;  %v460_v54 = vadd.f32 %v459_v47, %v59_v32  ;;  %v583_v55 = vsel %vm119_vm14, %v392_v44, %v380_v33  ;;  %v449_v58 = vrot.slane %v448_v49, 2 }
 0x1aa   :  { %v416_v56 = vadd.f32 %v415_v48, %v414_v42  ;;  %v427_v57 = vrot.slane %v426_v53, 1  ;;  %v438_v59 = vadd.f32 %v437_v51, %v436_v46  ;;  %v143_v16 = vshll.u32 %v142_v15, 16  ;;  %v2602_v48 = vld [vmem:[%s3862_s1 + $0x100] ss:$0 sm:$0xff] }
 0x1ab   :  { %v461_v60 = vrot.slane %v460_v54, 2  ;;  %v584_v39 = vsel %vm121_vm15, %v404_v50, %v583_v55  ;;  %v450_v62 = vadd.f32 %v449_v58, %v448_v49  ;;  %v2713_v23 = vmov 269488144  }
 0x1ac   :  { %v428_v61 = vadd.f32 %v427_v57, %v426_v53  ;;  %v585_v63 = vsel %vm123_vm0, %v416_v56, %v584_v39  ;;  %v439_v0 = vrot.slane %v438_v59, 1  ;;  %v166_v24 = vunpack.c.l.s4 %v2713_v23 }
 0x1ad   :  { %v462_v1 = vadd.f32 %v461_v60, %v460_v54  ;;  %v451_v2 = vrot.slane %v450_v62, 1  ;;  %v2714_v17 = vmov 842150450   ;;  %v2715_v26 = vmov 1414812756  }
 0x1ae   :  { %v586_v4 = vsel %vm125_vm1, %v428_v61, %v585_v63  ;;  %v440_v5 = vadd.f32 %v439_v0, %v438_v59  ;;  %v170_v25 = vunpack.c.l.s4 %v2714_v17  ;;  %v174_v27 = vunpack.c.l.s4 %v2715_v26 }
 0x1af   :  { %v463_v9 = vrot.slane %v462_v1, 1  ;;  %v452_v10 = vadd.f32 %v451_v2, %v450_v62  ;;  %v3096_v32 = vunpack.c.0.s8 %v166_v24  ;;  %v2716_v44 = vmov 16  }
 0x1b0   :  { %v587_v8 = vsel %vm127_vm2, %v440_v5, %v586_v4  ;;  %v3098_v33 = vunpack.c.0.s8 %v170_v25  ;;  %v3100_v34 = vunpack.c.0.s8 %v174_v27  ;;  %2577 = vset.pattern.permute.xlu0 %v2716_v44  ;;  %2578 = vset.pattern.permute.xlu2 %v2716_v44  ;;  %v640_v45 = vadd.f32 %v639_v52, %v613_v43 }
 0x1b1   :  { %v464_v11 = vadd.f32 %v463_v9, %v462_v1  ;;  %v588_v12 = vsel %vm551_vm4, %v452_v10, %v587_v8  ;;  %2579 = vset.pattern.permute.xlu1 %v2716_v44  ;;  %v2717_v8 = vmov 17  }
 0x1b3   :  { %v589_v14 = vsel %vm553_vm5, %v464_v11, %v588_v12  ;;  %vm1110_vm5 = vcmask 46080  }
 0x1b4   :  { %644 = vmatmul.f32.gmra.mxu1 %v589_v14 }
 0x1fd   :  { %v140_v7 = vpop.xlane.xlu1 %139 }
 0x1fe   :  { %v141_v13 = vcvt.f32.s32 %v140_v7 }
 0x200   :  { %v144_v18 = vadd.s32 %v143_v16, %v141_v13 }
 0x202   :  { %vm145_vm7 = vcmp.ge.s32.totalorder %v144_v18, 0  ;;  %v146_v6 = vadd.s32 1, %v144_v18 }
 0x204   :  { %v147_v19 = vsel %vm145_vm7, %v146_v6, 8 }
 0x205   :  { %v148_v20 = vcvt.s32.f32 %v147_v19 }
 0x207   :  { %2604 = vrcp.f32 %v148_v20  ;;  %v160_v29 = vand.u32 2147483648, %v148_v20  ;;  %v158_v31 = vand.u32 2147483647, %v148_v20  ;;  %vm154_vm9 = vweird.f32 %v148_v20 }
 0x209   :  { %v161_v36 = vor.u32 1.1754944e-38, %v160_v29  ;;  %vm159_vm11 = vcmp.eq.f32.partialorder %v158_v31, 8.507059e+37 }
 0x20d   :  { %v2605_v21 = vpop.eup %2604 }
 0x20e   :  { %v150_v22 = vmul.f32 %v2605_v21, %v148_v20  ;;  %vm155_vm8 = vweird.f32 %v2605_v21 }
 0x20f   :  { %vm156_vm10 = vmor %vm154_vm9, %vm155_vm8 }
 0x210   :  { %v151_v28 = vsub.f32 1.0, %v150_v22 }
 0x211   :  { %v616_v46 = vpop.f32.mrf.mxu0 }
 0x212   :  { %v152_v30 = vmul.f32 %v2605_v21, %v151_v28 }
 0x214   :  { %v153_v35 = vadd.f32 %v2605_v21, %v152_v30 }
 0x216   :  { %v157_v37 = vsel %vm156_vm10, %v2605_v21, %v153_v35 }
 0x217   :  { %v162_v38 = vsel %vm159_vm11, %v161_v36, %v157_v37 }
 0x218   :  { %v168_v40 = vperm.slane %v162_v38, %v3096_v32  ;;  %v172_v41 = vperm.slane %v162_v38, %v3098_v33  ;;  %v176_v42 = vperm.slane %v162_v38, %v3100_v34 }
 0x219   :  { %v642_v47 = vpop.f32.mrf.mxu1 }
 0x21a   :  { %648 = vst [vmem:[#allocation1] ss:$4 sm:$0xff] %v168_v40  ;;  %v643_v50 = vadd.f32 %v642_v47, %v616_v46 }
 0x21b   :  { %650 = vst [vmem:[#allocation1 + $0x1] ss:$4 sm:$0xff] %v172_v41 }
 0x21c   :  { %652 = vst [vmem:[#allocation1 + $0x2] ss:$4 sm:$0xff] %v176_v42 }
 0x21d   :  { %654 = vst [vmem:[#allocation1 + $0x3] ss:$4 sm:$0xff] %v168_v40 }
 0x21e   :  { %656 = vst [vmem:[#allocation1 + $0x20] ss:$4 sm:$0xff] %v172_v41 }
 0x21f   :  { %658 = vst [vmem:[#allocation1 + $0x21] ss:$4 sm:$0xff] %v176_v42 }
 0x220   :  { %660 = vst [vmem:[#allocation1 + $0x22] ss:$4 sm:$0xff] %v168_v40 }
 0x221   :  { %662 = vst [vmem:[#allocation1 + $0x23] ss:$4 sm:$0xff] %v172_v41 }
 0x224   :  { %v663_v53 = vld.sshfl [vmem:[#allocation1] sm:$0xff pattern:$0x73625140]  ;;  %v619_v1 = vpop.f32.mrf.mxu0 }
 0x225   :  { %665 = vst [vmem:[#allocation1] ss:$4 sm:$0xff] %v176_v42  ;;  %v673_v49 = vmul.f32 %v663_v53, %v640_v45 }
 0x226   :  { %666 = vst [vmem:[#allocation1 + $0x1] ss:$4 sm:$0xff] %v168_v40 }
 0x227   :  { %667 = vst [vmem:[#allocation1 + $0x2] ss:$4 sm:$0xff] %v172_v41  ;;  %v3111_v51 = vadd.f32 %v2602_v48, %v673_v49 }
 0x228   :  { %v664_v54 = vld.sshfl [vmem:[#allocation1 + $0x20] sm:$0xff pattern:$0x73625140]  ;;  %668 = vst [vmem:[#allocation1 + $0x3] ss:$4 sm:$0xff] %v176_v42 }
 0x229   :  { %v3114_v55 = vrot.slane %v3111_v51, 2  ;;  %v3117_v56 = vrot.slane %v3111_v51, 4  ;;  %795 = vst [vmem:[#allocation1 + $0x20] ss:$4 sm:$0xff] %v3111_v51  ;;  %v674_v57 = vmul.f32 %v664_v54, %v643_v50  ;;  %693 = vperm.xlu0 %2577, %v3111_v51   ;;  %v3122_v58 = vrot.slane %v3111_v51, 6 }
 0x22b   :  { %797 = vst [vmem:[#allocation1 + $0x21] ss:$4 sm:$0xff] %v3114_v55  ;;  %717 = vperm.xlu1 %2579, %v3122_v58   ;;  %701 = vperm.xlu2 %2578, %v3114_v55   ;;  %v3128_v59 = vadd.f32 %v2602_v48, %v674_v57 }
 0x22c   :  { %799 = vst [vmem:[#allocation1 + $0x22] ss:$4 sm:$0xff] %v3117_v56 }
 0x22d   :  { %v3133_v39 = vrot.slane %v3128_v59, 2  ;;  %v3137_v61 = vrot.slane %v3128_v59, 6  ;;  %v3146_v0 = vrot.slane %v3128_v59, 4 }
 0x22f   :  { %v669_v60 = vld.sshfl [vmem:[#allocation1] sm:$0xff pattern:$0x73625140] }
 0x230   :  { %788 = vst [vmem:[#allocation1] ss:$4 sm:$0xff] %v3111_v51 }
 0x231   :  { %790 = vst [vmem:[#allocation1 + $0x1] ss:$4 sm:$0xff] %v3114_v55  ;;  %725 = vperm.xlu0 %2577, %v3128_v59   ;;  %v645_v4 = vpop.f32.mrf.mxu1 }
 0x232   :  { %792 = vst [vmem:[#allocation1 + $0x2] ss:$4 sm:$0xff] %v3117_v56  ;;  %v646_v5 = vadd.f32 %v645_v4, %v619_v1 }
 0x233   :  { %v800_v62 = vld.sshfl [vmem:[#allocation1 + $0x20] sm:$0xff pattern:$0x73625140]  ;;  %749 = vperm.xlu1 %2579, %v3137_v61   ;;  %733 = vperm.xlu2 %2578, %v3133_v39  }
 0x234   :  { %805 = vst [vmem:[#allocation1 + $0x20] ss:$4 sm:$0xff] %v3111_v51  ;;  %v675_v9 = vmul.f32 %v669_v60, %v646_v5 }
 0x235   :  { %806 = vst [vmem:[#allocation1 + $0x21] ss:$4 sm:$0xff] %v3114_v55 }
 0x236   :  { %807 = vst [vmem:[#allocation1 + $0x22] ss:$4 sm:$0xff] %v3117_v56  ;;  %v3156_v10 = vadd.f32 %v2602_v48, %v675_v9 }
 0x238   :  { %v3160_v12 = vrot.slane %v3156_v10, 2  ;;  %v3203_v24 = vrot.slane %v3156_v10, 4  ;;  %v3206_v25 = vrot.slane %v3156_v10, 6 }
 0x239   :  { %v793_v63 = vld.sshfl [vmem:[#allocation1] sm:$0xff pattern:$0x73625140]  ;;  %709 = vperm.xlu0 %2577, %v3117_v56  }
 0x23a   :  { %801 = vst [vmem:[#allocation1] ss:$4 sm:$0xff] %v3111_v51 }
 0x23b   :  { %802 = vst [vmem:[#allocation1 + $0x1] ss:$4 sm:$0xff] %v3114_v55  ;;  %741 = vperm.xlu2 %2578, %v3146_v0   ;;  %765 = vperm.xlu1 %2579, %v3160_v12  }
 0x23c   :  { %803 = vst [vmem:[#allocation1 + $0x2] ss:$4 sm:$0xff] %v3117_v56 }
 0x23d   :  { %v808_v2 = vld.sshfl [vmem:[#allocation1 + $0x20] sm:$0xff pattern:$0x73625140] }
 0x23e   :  { %813 = vst [vmem:[#allocation1 + $0x20] ss:$4 sm:$0xff] %v3111_v51 }
 0x23f   :  { %814 = vst [vmem:[#allocation1 + $0x21] ss:$4 sm:$0xff] %v3114_v55 }
 0x240   :  { %815 = vst [vmem:[#allocation1 + $0x22] ss:$4 sm:$0xff] %v3117_v56 }
 0x241   :  { %757 = vperm.xlu0 %2577, %v3156_v10  }
 0x243   :  { %v804_v11 = vld.sshfl [vmem:[#allocation1] sm:$0xff pattern:$0x73625140]  ;;  %2581 = vset.pattern.permute.xlu2 %v2717_v8  ;;  %2582 = vset.pattern.permute.xlu1 %v2717_v8 }
 0x244   :  { %809 = vst [vmem:[#allocation1] ss:$4 sm:$0xff] %v3111_v51  ;;  %899 = vperm.xlu2 %2581, %v808_v2  }
 0x245   :  { %810 = vst [vmem:[#allocation1 + $0x1] ss:$4 sm:$0xff] %v3114_v55 }
 0x246   :  { %811 = vst [vmem:[#allocation1 + $0x2] ss:$4 sm:$0xff] %v3117_v56 }
 0x247   :  { %v816_v14 = vld.sshfl [vmem:[#allocation1 + $0x20] sm:$0xff pattern:$0x73625140] }
 0x248   :  { %821 = vst [vmem:[#allocation1 + $0x20] ss:$4 sm:$0xff] %v3122_v58  ;;  %905 = vperm.xlu1 %2582, %v816_v14  }
 0x249   :  { %822 = vst [vmem:[#allocation1 + $0x21] ss:$4 sm:$0xff] %v3128_v59  ;;  %2580 = vset.pattern.permute.xlu0 %v2717_v8 }
 0x24a   :  { %823 = vst [vmem:[#allocation1 + $0x22] ss:$4 sm:$0xff] %v3133_v39  ;;  %893 = vperm.xlu0 %2580, %v800_v62  }
 0x24d   :  { %v812_v15 = vld.sshfl [vmem:[#allocation1] sm:$0xff pattern:$0x73625140] }
 0x24e   :  { %817 = vst [vmem:[#allocation1] ss:$4 sm:$0xff] %v3122_v58 }
 0x24f   :  { %818 = vst [vmem:[#allocation1 + $0x1] ss:$4 sm:$0xff] %v3128_v59 }
 0x250   :  { %819 = vst [vmem:[#allocation1 + $0x2] ss:$4 sm:$0xff] %v3133_v39 }
 0x251   :  { %v824_v7 = vld.sshfl [vmem:[#allocation1 + $0x20] sm:$0xff pattern:$0x73625140] }
 0x252   :  { %829 = vst [vmem:[#allocation1 + $0x20] ss:$4 sm:$0xff] %v3122_v58  ;;  %890 = vperm.xlu0 %2580, %v793_v63   ;;  %911 = vperm.xlu1 %2582, %v824_v7  }
 0x253   :  { %830 = vst [vmem:[#allocation1 + $0x21] ss:$4 sm:$0xff] %v3128_v59 }
 0x254   :  { %831 = vst [vmem:[#allocation1 + $0x22] ss:$4 sm:$0xff] %v3133_v39 }
 0x257   :  { %v820_v16 = vld.sshfl [vmem:[#allocation1] sm:$0xff pattern:$0x73625140] }
 0x258   :  { %825 = vst [vmem:[#allocation1] ss:$4 sm:$0xff] %v3122_v58  ;;  %908 = vperm.xlu2 %2581, %v820_v16  }
 0x259   :  { %826 = vst [vmem:[#allocation1 + $0x1] ss:$4 sm:$0xff] %v3128_v59 }
 0x25a   :  { %827 = vst [vmem:[#allocation1 + $0x2] ss:$4 sm:$0xff] %v3133_v39  ;;  %896 = vperm.xlu0 %2580, %v804_v11  }
 0x25b   :  { %v832_v13 = vld.sshfl [vmem:[#allocation1 + $0x20] sm:$0xff pattern:$0x73625140] }
 0x25c   :  { %837 = vst [vmem:[#allocation1 + $0x20] ss:$4 sm:$0xff] %v3122_v58 }
 0x25d   :  { %838 = vst [vmem:[#allocation1 + $0x21] ss:$4 sm:$0xff] %v3128_v59 }
 0x25e   :  { %839 = vst [vmem:[#allocation1 + $0x22] ss:$4 sm:$0xff] %v3133_v39 }
 0x260   :  { %917 = vperm.xlu2 %2581, %v832_v13  }
 0x261   :  { %v828_v18 = vld.sshfl [vmem:[#allocation1] sm:$0xff pattern:$0x73625140] }
 0x262   :  { %833 = vst [vmem:[#allocation1] ss:$4 sm:$0xff] %v3122_v58  ;;  %902 = vperm.xlu0 %2580, %v812_v15  }
 0x263   :  { %834 = vst [vmem:[#allocation1 + $0x1] ss:$4 sm:$0xff] %v3128_v59 }
 0x264   :  { %835 = vst [vmem:[#allocation1 + $0x2] ss:$4 sm:$0xff] %v3133_v39 }
 0x265   :  { %v840_v6 = vld.sshfl [vmem:[#allocation1 + $0x20] sm:$0xff pattern:$0x73625140] }
 0x266   :  { %845 = vst [vmem:[#allocation1 + $0x20] ss:$4 sm:$0xff] %v3146_v0 }
 0x267   :  { %846 = vst [vmem:[#allocation1 + $0x21] ss:$4 sm:$0xff] %v3137_v61 }
 0x268   :  { %847 = vst [vmem:[#allocation1 + $0x22] ss:$4 sm:$0xff] %v3156_v10  ;;  %923 = vperm.xlu2 %2581, %v840_v6  }
 0x26a   :  { %914 = vperm.xlu0 %2580, %v828_v18  }
 0x26b   :  { %v836_v19 = vld.sshfl [vmem:[#allocation1] sm:$0xff pattern:$0x73625140] }
 0x26c   :  { %841 = vst [vmem:[#allocation1] ss:$4 sm:$0xff] %v3146_v0  ;;  %920 = vperm.xlu1 %2582, %v836_v19  }
 0x26d   :  { %842 = vst [vmem:[#allocation1 + $0x1] ss:$4 sm:$0xff] %v3137_v61 }
 0x26e   :  { %843 = vst [vmem:[#allocation1 + $0x2] ss:$4 sm:$0xff] %v3156_v10 }
 0x26f   :  { %v848_v20 = vld.sshfl [vmem:[#allocation1 + $0x20] sm:$0xff pattern:$0x73625140] }
 0x270   :  { %853 = vst [vmem:[#allocation1 + $0x20] ss:$4 sm:$0xff] %v3146_v0  ;;  %929 = vperm.xlu2 %2581, %v848_v20  }
 0x271   :  { %854 = vst [vmem:[#allocation1 + $0x21] ss:$4 sm:$0xff] %v3137_v61 }
 0x272   :  { %855 = vst [vmem:[#allocation1 + $0x22] ss:$4 sm:$0xff] %v3156_v10 }
 0x275   :  { %v844_v21 = vld.sshfl [vmem:[#allocation1] sm:$0xff pattern:$0x73625140] }
 0x276   :  { %849 = vst [vmem:[#allocation1] ss:$4 sm:$0xff] %v3146_v0  ;;  %926 = vperm.xlu1 %2582, %v844_v21  }
 0x277   :  { %850 = vst [vmem:[#allocation1 + $0x1] ss:$4 sm:$0xff] %v3137_v61 }
 0x278   :  { %851 = vst [vmem:[#allocation1 + $0x2] ss:$4 sm:$0xff] %v3156_v10 }
 0x279   :  { %v856_v22 = vld.sshfl [vmem:[#allocation1 + $0x20] sm:$0xff pattern:$0x73625140] }
 0x27a   :  { %861 = vst [vmem:[#allocation1 + $0x20] ss:$4 sm:$0xff] %v3146_v0  ;;  %935 = vperm.xlu0 %2580, %v856_v22  }
 0x27b   :  { %862 = vst [vmem:[#allocation1 + $0x21] ss:$4 sm:$0xff] %v3137_v61 }
 0x27c   :  { %863 = vst [vmem:[#allocation1 + $0x22] ss:$4 sm:$0xff] %v3156_v10 }
 0x27f   :  { %v852_v23 = vld.sshfl [vmem:[#allocation1] sm:$0xff pattern:$0x73625140] }
 0x280   :  { %857 = vst [vmem:[#allocation1] ss:$4 sm:$0xff] %v3146_v0  ;;  %932 = vperm.xlu1 %2582, %v852_v23  }
 0x281   :  { %858 = vst [vmem:[#allocation1 + $0x1] ss:$4 sm:$0xff] %v3137_v61 }
 0x282   :  { %859 = vst [vmem:[#allocation1 + $0x2] ss:$4 sm:$0xff] %v3156_v10 }
 0x283   :  { %v864_v17 = vld.sshfl [vmem:[#allocation1 + $0x20] sm:$0xff pattern:$0x73625140] }
 0x284   :  { %869 = vst [vmem:[#allocation1 + $0x20] ss:$4 sm:$0xff] %v3160_v12 }
 0x285   :  { %870 = vst [vmem:[#allocation1 + $0x21] ss:$4 sm:$0xff] %v3203_v24  ;;  %v702_v37 = vpop.permute.xlu2 %701 }
 0x286   :  { %871 = vst [vmem:[#allocation1 + $0x22] ss:$4 sm:$0xff] %v3206_v25  ;;  %v707_v7 = vperm.slane %v702_v37, %v3096_v32 }
 0x288   :  { %941 = vperm.xlu1 %2582, %v864_v17  }
 0x289   :  { %v860_v26 = vld.sshfl [vmem:[#allocation1] sm:$0xff pattern:$0x73625140] }
 0x28a   :  { %865 = vst [vmem:[#allocation1] ss:$4 sm:$0xff] %v3160_v12  ;;  %938 = vperm.xlu2 %2581, %v860_v26  }
 0x28b   :  { %866 = vst [vmem:[#allocation1 + $0x1] ss:$4 sm:$0xff] %v3203_v24 }
 0x28c   :  { %867 = vst [vmem:[#allocation1 + $0x2] ss:$4 sm:$0xff] %v3206_v25 }
 0x28d   :  { %v872_v27 = vld.sshfl [vmem:[#allocation1 + $0x20] sm:$0xff pattern:$0x73625140]  ;;  %v3233_v42 = vpop.permute.xlu2 %733 }
 0x28e   :  { %877 = vst [vmem:[#allocation1 + $0x20] ss:$4 sm:$0xff] %v3160_v12 }
 0x28f   :  { %878 = vst [vmem:[#allocation1 + $0x21] ss:$4 sm:$0xff] %v3203_v24 }
 0x290   :  { %879 = vst [vmem:[#allocation1 + $0x22] ss:$4 sm:$0xff] %v3206_v25  ;;  %947 = vperm.xlu1 %2582, %v872_v27  }
 0x293   :  { %v868_v28 = vld.sshfl [vmem:[#allocation1] sm:$0xff pattern:$0x73625140] }
 0x294   :  { %873 = vst [vmem:[#allocation1] ss:$4 sm:$0xff] %v3160_v12  ;;  %944 = vperm.xlu2 %2581, %v868_v28  }
 0x295   :  { %874 = vst [vmem:[#allocation1 + $0x1] ss:$4 sm:$0xff] %v3203_v24  ;;  %v3240_v45 = vpop.permute.xlu2 %741 }
 0x296   :  { %875 = vst [vmem:[#allocation1 + $0x2] ss:$4 sm:$0xff] %v3206_v25 }
 0x297   :  { %v880_v29 = vld.sshfl [vmem:[#allocation1 + $0x20] sm:$0xff pattern:$0x73625140] }
 0x298   :  { %886 = vst [vmem:[#allocation1 + $0x21] ss:$4 sm:$0xff] %v3203_v24  ;;  %953 = vperm.xlu1 %2582, %v880_v29  }
 0x299   :  { %885 = vst [vmem:[#allocation1 + $0x20] ss:$4 sm:$0xff] %v3160_v12 }
 0x29a   :  { %887 = vst [vmem:[#allocation1 + $0x22] ss:$4 sm:$0xff] %v3206_v25 }
 0x29b   :  { %v694_v30 = vpop.permute.xlu0 %693 }
 0x29c   :  { %v699_v14 = vperm.slane %v694_v30, %v3096_v32 }
 0x29d   :  { %v876_v31 = vld.sshfl [vmem:[#allocation1] sm:$0xff pattern:$0x73625140]  ;;  %v3231_v41 = vpop.permute.xlu1 %717 }
 0x29e   :  { %882 = vst [vmem:[#allocation1 + $0x1] ss:$4 sm:$0xff] %v3203_v24  ;;  %950 = vperm.xlu2 %2581, %v876_v31   ;;  %v900_v48 = vpop.permute.xlu2 %899 }
 0x29f   :  { %881 = vst [vmem:[#allocation1] ss:$4 sm:$0xff] %v3160_v12  ;;  %v964_v2 = vperm.slane %v900_v48, %v2745_v3 }
 0x2a0   :  { %883 = vst [vmem:[#allocation1 + $0x2] ss:$4 sm:$0xff] %v3206_v25  ;;  %2584 = vset.pattern.permute.xlu1 %v2716_v44 }
 0x2a1   :  { %781 = vperm.xlu1 %2584, %v3206_v25   ;;  %v888_v36 = vld.sshfl [vmem:[#allocation1 + $0x20] sm:$0xff pattern:$0x73625140] }
 0x2a3   :  { %v3228_v35 = vpop.permute.xlu0 %725 }
 0x2a5   :  { %v3238_v52 = vpop.permute.xlu1 %749 }
 0x2a6   :  { %959 = vperm.xlu2 %2581, %v888_v36  }
 0x2a7   :  { %v884_v38 = vld.sshfl [vmem:[#allocation1] sm:$0xff pattern:$0x73625140] }
 0x2a8   :  { %956 = vperm.xlu0 %2580, %v884_v38  }
 0x2ab   :  { %v710_v40 = vpop.permute.xlu0 %709 }
 0x2ac   :  { %v715_v13 = vperm.slane %v710_v40, %v3096_v32 }
 0x2ad   :  { %v3242_v47 = vpop.permute.xlu1 %765 }
 0x2ae   :  { %2583 = vset.pattern.permute.xlu2 %v2716_v44 }
 0x2af   :  { %773 = vperm.xlu2 %2583, %v3203_v24  }
 0x2b2   :  { %v909_v50 = vpop.permute.xlu2 %908 }
 0x2b3   :  { %v3236_v43 = vpop.permute.xlu0 %757  ;;  %v967_v26 = vperm.slane %v909_v50, %v2745_v3 }
 0x2ba   :  { %v906_v49 = vpop.permute.xlu1 %905  ;;  %v918_v4 = vpop.permute.xlu2 %917 }
 0x2bb   :  { %v966_v11 = vperm.slane %v906_v49, %v2745_v3  ;;  %v970_v37 = vperm.slane %v918_v4, %v2745_v3 }
 0x2bc   :  { %v894_v46 = vpop.permute.xlu0 %893 }
 0x2bd   :  { %v962_v60 = vperm.slane %v894_v46, %v2745_v3 }
 0x2c2   :  { %v924_v30 = vpop.permute.xlu2 %923 }
 0x2c3   :  { %v972_v49 = vperm.slane %v924_v30, %v2745_v3 }
 0x2c4   :  { %v891_v53 = vpop.permute.xlu0 %890  ;;  %v912_v63 = vpop.permute.xlu1 %911 }
 0x2c5   :  { %v961_v54 = vperm.slane %v891_v53, %v2745_v3  ;;  %v968_v20 = vperm.slane %v912_v63, %v2745_v3 }
 0x2c7   :  { %v985_v62 = vsel %vm119_vm14, %v962_v60, %v961_v54  ;;  %v990_v38 = vsel %vm119_vm14, %v968_v20, %v967_v26 }
 0x2cc   :  { %v897_v44 = vpop.permute.xlu0 %896 }
 0x2cd   :  { %v963_v57 = vperm.slane %v897_v44, %v2745_v3  ;;  %v723_v44 = vperm.slane %v3231_v41, %v3096_v32  ;;  %v930_v41 = vpop.permute.xlu2 %929 }
 0x2cf   :  { %v986_v1 = vsel %vm121_vm15, %v963_v57, %v985_v62  ;;  %v739_v57 = vperm.slane %v3233_v42, %v3096_v32  ;;  %v731_v62 = vperm.slane %v3228_v35, %v3096_v32 }
 0x2d0   :  { %v987_v8 = vsel %vm123_vm0, %v964_v2, %v986_v1 }
 0x2d4   :  { %v903_v5 = vpop.permute.xlu0 %902 }
 0x2d5   :  { %v965_v9 = vperm.slane %v903_v5, %v2745_v3 }
 0x2d7   :  { %v988_v15 = vsel %vm125_vm1, %v965_v9, %v987_v8 }
 0x2d8   :  { %v989_v16 = vsel %vm127_vm2, %v966_v11, %v988_v15 }
 0x2d9   :  { %v1005_v18 = vrot.slane %v989_v16, 2  ;;  %v1006_v6 = vrot.slane %v989_v16, 4  ;;  %v1025_v19 = vadd.f32 %v989_v16, %v699_v14 }
 0x2db   :  { %v1026_v22 = vadd.f32 %v1005_v18, %v707_v7  ;;  %v1027_v23 = vadd.f32 %v1006_v6, %v715_v13  ;;  %vm1037_vm12 = vcmp.gt.f32.partialorder %v1025_v19, 0.0  ;;  %v1049_v17 = vmul.f32 0.2, %v1025_v19 }
 0x2dc   :  { %v915_v27 = vpop.permute.xlu0 %914 }
 0x2dd   :  { %vm1038_vm13 = vcmp.gt.f32.partialorder %v1026_v22, 0.0  ;;  %vm1039_vm3 = vcmp.gt.f32.partialorder %v1027_v23, 0.0  ;;  %v1050_v28 = vmul.f32 0.2, %v1026_v22  ;;  %v1051_v29 = vmul.f32 0.2, %v1027_v23 }
 0x2de   :  { %v921_v21 = vpop.permute.xlu1 %920  ;;  %v3260_v31 = vsel %vm1037_vm12, %v1025_v19, %v1049_v17  ;;  %v969_v36 = vperm.slane %v915_v27, %v2745_v3  ;;  %v974_v19 = vperm.slane %v930_v41, %v2745_v3 }
 0x2df   :  { %v3265_v40 = vsel %vm1038_vm13, %v1026_v22, %v1050_v28  ;;  %v3267_v46 = vsel %vm1039_vm3, %v1027_v23, %v1051_v29  ;;  %1085 = vst [vmem:[#allocation1] ss:$4 sm:$0xff] %v3260_v31  ;;  %v971_v48 = vperm.slane %v921_v21, %v2745_v3  ;;  %vm1370_vm3 = vcmask 1045504  }
 0x2e0   :  { %1087 = vst [vmem:[#allocation1 + $0x1] ss:$4 sm:$0xff] %v3265_v40  ;;  %v991_v53 = vsel %vm121_vm15, %v969_v36, %v990_v38  ;;  %v747_v38 = vperm.slane %v3240_v45, %v3096_v32 }
 0x2e1   :  { %1089 = vst [vmem:[#allocation1 + $0x2] ss:$4 sm:$0xff] %v3267_v46  ;;  %v992_v50 = vsel %vm123_vm0, %v970_v37, %v991_v53 }
 0x2e2   :  { %v993_v54 = vsel %vm125_vm1, %v971_v48, %v992_v50  ;;  %v755_v48 = vperm.slane %v3238_v52, %v3096_v32  ;;  %v763_v50 = vperm.slane %v3236_v43, %v3096_v32 }
 0x2e3   :  { %v994_v60 = vsel %vm127_vm2, %v972_v49, %v993_v54 }
 0x2e4   :  { %v1007_v63 = vrot.slane %v994_v60, 2  ;;  %v1008_v1 = vrot.slane %v994_v60, 4  ;;  %v1028_v2 = vadd.f32 %v994_v60, %v723_v44  ;;  %v939_v20 = vpop.permute.xlu2 %938 }
 0x2e5   :  { %v977_v28 = vperm.slane %v939_v20, %v2745_v3 }
 0x2e6   :  { %v1029_v5 = vadd.f32 %v1007_v63, %v731_v62  ;;  %v1030_v9 = vadd.f32 %v1008_v1, %v739_v57  ;;  %vm1040_vm4 = vcmp.gt.f32.partialorder %v1028_v2, 0.0  ;;  %v1052_v11 = vmul.f32 0.2, %v1028_v2 }
 0x2e8   :  { %v927_v4 = vpop.permute.xlu1 %926  ;;  %v1090_v8 = vld.sshfl [vmem:[#allocation1] sm:$0xff pattern:$0x73625140]  ;;  %vm1041_vm6 = vcmp.gt.f32.partialorder %v1029_v5, 0.0  ;;  %vm1042_vm7 = vcmp.gt.f32.partialorder %v1030_v9, 0.0  ;;  %v3284_v15 = vsel %vm1040_vm4, %v1028_v2, %v1052_v11  ;;  %vm1367_vm4 = vcmask 48128  }
 0x2e9   :  { %v1053_v14 = vmul.f32 0.2, %v1029_v5  ;;  %v1054_v42 = vmul.f32 0.2, %v1030_v9  ;;  %v1111_v7 = vsel %vm1110_vm5, %v1090_v8, -inf  ;;  %v973_v18 = vperm.slane %v927_v4, %v2745_v3 }
 0x2ea   :  { %1092 = vst [vmem:[#allocation1 + $0x20] ss:$4 sm:$0xff] %v3284_v15  ;;  %1112 = vmax.xlane.f32.xlu0 %v1111_v7 }
 0x2eb   :  { %v3288_v35 = vsel %vm1041_vm6, %v1029_v5, %v1053_v14  ;;  %v3290_v16 = vsel %vm1042_vm7, %v1030_v9, %v1054_v42  ;;  %v995_v23 = vsel %vm119_vm14, %v974_v19, %v973_v18 }
 0x2ec   :  { %1094 = vst [vmem:[#allocation1 + $0x21] ss:$4 sm:$0xff] %v3288_v35  ;;  %v936_v13 = vpop.permute.xlu0 %935 }
 0x2ed   :  { %1096 = vst [vmem:[#allocation1 + $0x22] ss:$4 sm:$0xff] %v3290_v16  ;;  %v976_v22 = vperm.slane %v936_v13, %v2745_v3 }
 0x2ee   :  { %v945_v53 = vpop.permute.xlu2 %944 }
 0x2ef   :  { %v979_v42 = vperm.slane %v945_v53, %v2745_v3 }
 0x2f2   :  { %v933_v6 = vpop.permute.xlu1 %932 }
 0x2f3   :  { %v975_v21 = vperm.slane %v933_v6, %v2745_v3 }
 0x2f4   :  { %v1097_v26 = vld.sshfl [vmem:[#allocation1 + $0x20] sm:$0xff pattern:$0x73625140] }
 0x2f5   :  { %v996_v17 = vsel %vm121_vm15, %v975_v21, %v995_v23  ;;  %v1114_v29 = vsel %vm1110_vm5, %v1097_v26, -inf  ;;  %v771_v26 = vperm.slane %v3242_v47, %v3096_v32 }
 0x2f6   :  { %v997_v27 = vsel %vm123_vm0, %v976_v22, %v996_v17  ;;  %1115 = vmax.xlane.f32.xlu2 %v1114_v29 }
 0x2f7   :  { %v998_v30 = vsel %vm125_vm1, %v977_v28, %v997_v27 }
 0x2f8   :  { %v951_v43 = vpop.permute.xlu2 %950 }
 0x2f9   :  { %v981_v18 = vperm.slane %v951_v43, %v2745_v3 }
 0x2fa   :  { %v942_v36 = vpop.permute.xlu1 %941 }
 0x2fb   :  { %v978_v37 = vperm.slane %v942_v36, %v2745_v3 }
 0x2fd   :  { %v999_v49 = vsel %vm127_vm2, %v978_v37, %v998_v30 }
 0x2fe   :  { %v1009_v44 = vrot.slane %v999_v49, 2  ;;  %v1010_v54 = vrot.slane %v999_v49, 4  ;;  %v1031_v57 = vadd.f32 %v999_v49, %v747_v38 }
 0x300   :  { %v1032_v60 = vadd.f32 %v1009_v44, %v755_v48  ;;  %v1033_v62 = vadd.f32 %v1010_v54, %v763_v50  ;;  %vm1043_vm8 = vcmp.gt.f32.partialorder %v1031_v57, 0.0  ;;  %v1055_v63 = vmul.f32 0.2, %v1031_v57  ;;  %v960_v41 = vpop.permute.xlu2 %959 }
 0x301   :  { %v984_v22 = vperm.slane %v960_v41, %v2745_v3 }
 0x302   :  { %vm1044_vm9 = vcmp.gt.f32.partialorder %v1032_v60, 0.0  ;;  %vm1045_vm10 = vcmp.gt.f32.partialorder %v1033_v62, 0.0  ;;  %v1056_v1 = vmul.f32 0.2, %v1032_v60  ;;  %v1057_v45 = vmul.f32 0.2, %v1033_v62  ;;  %v948_v5 = vpop.permute.xlu1 %947 }
 0x303   :  { %v3312_v2 = vsel %vm1043_vm8, %v1031_v57, %v1055_v63  ;;  %v980_v14 = vperm.slane %v948_v5, %v2745_v3 }
 0x304   :  { %v3314_v52 = vsel %vm1044_vm9, %v1032_v60, %v1056_v1  ;;  %v3316_v4 = vsel %vm1045_vm10, %v1033_v62, %v1057_v45  ;;  %1098 = vst [vmem:[#allocation1] ss:$4 sm:$0xff] %v3312_v2 }
 0x305   :  { %1099 = vst [vmem:[#allocation1 + $0x1] ss:$4 sm:$0xff] %v3314_v52  ;;  %v1000_v7 = vsel %vm119_vm14, %v980_v14, %v979_v42 }
 0x306   :  { %1100 = vst [vmem:[#allocation1 + $0x2] ss:$4 sm:$0xff] %v3316_v4  ;;  %v1001_v20 = vsel %vm121_vm15, %v981_v18, %v1000_v7 }
 0x309   :  { %v774_v19 = vpop.permute.xlu2 %773 }
 0x30a   :  { %v954_v8 = vpop.permute.xlu1 %953  ;;  %v779_v28 = vperm.slane %v774_v19, %v3096_v32 }
 0x30b   :  { %v982_v13 = vperm.slane %v954_v8, %v2745_v3 }
 0x30d   :  { %v1101_v9 = vld.sshfl [vmem:[#allocation1] sm:$0xff pattern:$0x73625140]  ;;  %v1002_v23 = vsel %vm123_vm0, %v982_v13, %v1001_v20 }
 0x30e   :  { %v1117_v11 = vsel %vm1110_vm5, %v1101_v9, -inf }
 0x30f   :  { %1118 = vmax.xlane.f32.xlu1 %v1117_v11 }
 0x313   :  { %v782_v17 = vpop.permute.xlu1 %781 }
 0x314   :  { %v787_v30 = vperm.slane %v782_v17, %v3096_v32 }
 0x31a   :  { %v957_v6 = vpop.permute.xlu0 %956 }
 0x31b   :  { %v983_v21 = vperm.slane %v957_v6, %v2745_v3 }
 0x31d   :  { %v1003_v27 = vsel %vm125_vm1, %v983_v21, %v1002_v23 }
 0x31e   :  { %v1004_v29 = vsel %vm127_vm2, %v984_v22, %v1003_v27 }
 0x31f   :  { %v1011_v36 = vrot.slane %v1004_v29, 2  ;;  %v1012_v37 = vrot.slane %v1004_v29, 4  ;;  %v1034_v38 = vadd.f32 %v1004_v29, %v771_v26 }
 0x321   :  { %v1035_v48 = vadd.f32 %v1011_v36, %v779_v28  ;;  %v1036_v53 = vadd.f32 %v1012_v37, %v787_v30  ;;  %vm1046_vm11 = vcmp.gt.f32.partialorder %v1034_v38, 0.0  ;;  %v1058_v49 = vmul.f32 0.2, %v1034_v38 }
 0x323   :  { %vm1047_vm12 = vcmp.gt.f32.partialorder %v1035_v48, 0.0  ;;  %vm1048_vm13 = vcmp.gt.f32.partialorder %v1036_v53, 0.0  ;;  %v1059_v50 = vmul.f32 0.2, %v1035_v48  ;;  %v1060_v44 = vmul.f32 0.2, %v1036_v53 }
 0x324   :  { %v3337_v47 = vsel %vm1046_vm11, %v1034_v38, %v1058_v49 }
 0x325   :  { %v3339_v54 = vsel %vm1047_vm12, %v1035_v48, %v1059_v50  ;;  %v3341_v57 = vsel %vm1048_vm13, %v1036_v53, %v1060_v44  ;;  %1102 = vst [vmem:[#allocation1 + $0x20] ss:$4 sm:$0xff] %v3337_v47 }
 0x326   :  { %1103 = vst [vmem:[#allocation1 + $0x21] ss:$4 sm:$0xff] %v3339_v54 }
 0x327   :  { %1104 = vst [vmem:[#allocation1 + $0x22] ss:$4 sm:$0xff] %v3341_v57 }
 0x32e   :  { %v1105_v60 = vld.sshfl [vmem:[#allocation1 + $0x20] sm:$0xff pattern:$0x73625140] }
 0x32f   :  { %v1120_v62 = vsel %vm1110_vm5, %v1105_v60, -inf }
 0x330   :  { %1121 = vmax.xlane.f32.xlu0 %v1120_v62 }
 0x35d   :  { %v1113_v63 = vpop.xlane.xlu0 %1112 }
 0x35e   :  { %v1130_v1 = vperm.slane %v1113_v63, %v3096_v32  ;;  %v1134_v45 = vperm.slane %v1113_v63, %v3098_v33  ;;  %v1138_v43 = vperm.slane %v1113_v63, %v3100_v34 }
 0x360   :  { %v1187_v5 = vsub.f32 %v3260_v31, %v1130_v1  ;;  %v1188_v9 = vsub.f32 %v3265_v40, %v1134_v45  ;;  %v1189_v11 = vsub.f32 %v3267_v46, %v1138_v43 }
 0x362   :  { %v1199_v41 = vmul.f32 1.442695, %v1187_v5  ;;  %v1201_v8 = vmul.f32 1.442695, %v1188_v9  ;;  %v1203_v14 = vmul.f32 1.442695, %v1189_v11 }
 0x364   :  { %2606 = vpow2.f32 %v1199_v41 }
 0x365   :  { %2608 = vpow2.f32 %v1201_v8 }
 0x366   :  { %2610 = vpow2.f32 %v1203_v14 }
 0x369   :  { %v1116_v42 = vpop.xlane.xlu2 %1115 }
 0x36a   :  { %v3353_v7 = vpop.eup %2606  ;;  %v1142_v13 = vperm.slane %v1116_v42, %v3096_v32  ;;  %v1146_v18 = vperm.slane %v1116_v42, %v3098_v33  ;;  %v1150_v6 = vperm.slane %v1116_v42, %v3100_v34 }
 0x36b   :  { %v3358_v31 = vpop.eup %2608  ;;  %1235 = vst [vmem:[#allocation1] ss:$4 sm:$0xff] %v3353_v7 }
 0x36c   :  { %v3361_v40 = vpop.eup %2610  ;;  %1237 = vst [vmem:[#allocation1 + $0x1] ss:$4 sm:$0xff] %v3358_v31  ;;  %v1190_v46 = vsub.f32 %v3284_v15, %v1142_v13  ;;  %v1191_v19 = vsub.f32 %v3288_v35, %v1146_v18  ;;  %v1192_v20 = vsub.f32 %v3290_v16, %v1150_v6 }
 0x36d   :  { %1239 = vst [vmem:[#allocation1 + $0x2] ss:$4 sm:$0xff] %v3361_v40 }
 0x36e   :  { %v1205_v21 = vmul.f32 1.442695, %v1190_v46  ;;  %v1207_v22 = vmul.f32 1.442695, %v1191_v19  ;;  %v1209_v23 = vmul.f32 1.442695, %v1192_v20 }
 0x370   :  { %2612 = vpow2.f32 %v1205_v21 }
 0x371   :  { %2614 = vpow2.f32 %v1207_v22 }
 0x372   :  { %2616 = vpow2.f32 %v1209_v23 }
 0x374   :  { %v1240_v17 = vld.sshfl [vmem:[#allocation1] sm:$0xff pattern:$0x73625140] }
 0x375   :  { %v1260_v26 = vsel %vm1110_vm5, %v1240_v17, 0.0 }
 0x376   :  { %v3369_v27 = vpop.eup %2612  ;;  %1261 = vadd.xlane.f32.xlu2 %v1260_v26 }
 0x377   :  { %v3371_v28 = vpop.eup %2614  ;;  %1242 = vst [vmem:[#allocation1 + $0x20] ss:$4 sm:$0xff] %v3369_v27 }
 0x378   :  { %v3374_v15 = vpop.eup %2616  ;;  %1244 = vst [vmem:[#allocation1 + $0x21] ss:$4 sm:$0xff] %v3371_v28 }
 0x379   :  { %1246 = vst [vmem:[#allocation1 + $0x22] ss:$4 sm:$0xff] %v3374_v15 }
 0x380   :  { %v1247_v16 = vld.sshfl [vmem:[#allocation1 + $0x20] sm:$0xff pattern:$0x73625140] }
 0x381   :  { %v1263_v37 = vsel %vm1110_vm5, %v1247_v16, 0.0 }
 0x382   :  { %v1119_v35 = vpop.xlane.xlu1 %1118  ;;  %1264 = vadd.xlane.f32.xlu1 %v1263_v37 }
 0x383   :  { %v1154_v29 = vperm.slane %v1119_v35, %v3096_v32  ;;  %v1158_v30 = vperm.slane %v1119_v35, %v3098_v33  ;;  %v1162_v36 = vperm.slane %v1119_v35, %v3100_v34 }
 0x385   :  { %v1193_v38 = vsub.f32 %v3312_v2, %v1154_v29  ;;  %v1194_v48 = vsub.f32 %v3314_v52, %v1158_v30  ;;  %v1195_v53 = vsub.f32 %v3316_v4, %v1162_v36  ;;  %v2718_v2 = vmov 18  }
 0x386   :  { %2586 = vset.pattern.permute.xlu1 %v2718_v2  ;;  %2587 = vset.pattern.permute.xlu0 %v2718_v2 }
 0x387   :  { %v1211_v49 = vmul.f32 1.442695, %v1193_v38  ;;  %v1213_v50 = vmul.f32 1.442695, %v1194_v48  ;;  %v1215_v44 = vmul.f32 1.442695, %v1195_v53  ;;  %2585 = vset.pattern.permute.xlu2 %v2718_v2 }
 0x389   :  { %2618 = vpow2.f32 %v1211_v49 }
 0x38a   :  { %2620 = vpow2.f32 %v1213_v50 }
 0x38b   :  { %2622 = vpow2.f32 %v1215_v44 }
 0x38f   :  { %v3385_v60 = vpop.eup %2618 }
 0x390   :  { %v3387_v62 = vpop.eup %2620  ;;  %1248 = vst [vmem:[#allocation1] ss:$4 sm:$0xff] %v3385_v60 }
 0x391   :  { %v3390_v63 = vpop.eup %2622  ;;  %1249 = vst [vmem:[#allocation1 + $0x1] ss:$4 sm:$0xff] %v3387_v62 }
 0x392   :  { %1250 = vst [vmem:[#allocation1 + $0x2] ss:$4 sm:$0xff] %v3390_v63 }
 0x399   :  { %v1251_v52 = vld.sshfl [vmem:[#allocation1] sm:$0xff pattern:$0x73625140] }
 0x39a   :  { %v1266_v4 = vsel %vm1110_vm5, %v1251_v52, 0.0 }
 0x39b   :  { %1267 = vadd.xlane.f32.xlu0 %v1266_v4  ;;  %1539 = vperm.xlu1 %2586, %v3114_v55  }
 0x3a3   :  { %v1122_v1 = vpop.xlane.xlu0 %1121  ;;  %1555 = vperm.xlu1 %2586, %v3122_v58  }
 0x3a4   :  { %v1166_v45 = vperm.slane %v1122_v1, %v3096_v32  ;;  %v1170_v43 = vperm.slane %v1122_v1, %v3098_v33  ;;  %v1174_v5 = vperm.slane %v1122_v1, %v3100_v34 }
 0x3a6   :  { %v1196_v9 = vsub.f32 %v3337_v47, %v1166_v45  ;;  %v1197_v11 = vsub.f32 %v3339_v54, %v1170_v43  ;;  %v1198_v41 = vsub.f32 %v3341_v57, %v1174_v5  ;;  %v2719_v54 = vmov 19  }
 0x3a8   :  { %v1217_v8 = vmul.f32 1.442695, %v1196_v9  ;;  %v1219_v14 = vmul.f32 1.442695, %v1197_v11  ;;  %v1221_v42 = vmul.f32 1.442695, %v1198_v41 }
 0x3aa   :  { %2624 = vpow2.f32 %v1217_v8 }
 0x3ab   :  { %2626 = vpow2.f32 %v1219_v14  ;;  %1571 = vperm.xlu1 %2586, %v3133_v39  }
 0x3ac   :  { %2628 = vpow2.f32 %v1221_v42 }
 0x3af   :  { %1547 = vperm.xlu0 %2587, %v3117_v56  }
 0x3b0   :  { %v3408_v13 = vpop.eup %2624 }
 0x3b1   :  { %v3410_v18 = vpop.eup %2626  ;;  %1252 = vst [vmem:[#allocation1 + $0x20] ss:$4 sm:$0xff] %v3408_v13 }
 0x3b2   :  { %v3413_v47 = vpop.eup %2628  ;;  %1253 = vst [vmem:[#allocation1 + $0x21] ss:$4 sm:$0xff] %v3410_v18 }
 0x3b3   :  { %1254 = vst [vmem:[#allocation1 + $0x22] ss:$4 sm:$0xff] %v3413_v47  ;;  %2590 = vset.pattern.permute.xlu1 %v2719_v54 }
 0x3b7   :  { %2588 = vset.pattern.permute.xlu0 %v2719_v54 }
 0x3ba   :  { %v1255_v57 = vld.sshfl [vmem:[#allocation1 + $0x20] sm:$0xff pattern:$0x73625140] }
 0x3bb   :  { %v1269_v6 = vsel %vm1110_vm5, %v1255_v57, 0.0  ;;  %1633 = vst [vmem:[#allocation1 + $0x20] ss:$4 sm:$0xff] %v3111_v51 }
 0x3bc   :  { %1270 = vadd.xlane.f32.xlu2 %v1269_v6  ;;  %1635 = vst [vmem:[#allocation1 + $0x21] ss:$4 sm:$0xff] %v3114_v55 }
 0x3bd   :  { %1637 = vst [vmem:[#allocation1 + $0x22] ss:$4 sm:$0xff] %v3117_v56 }
 0x3c4   :  { %v1638_v46 = vld.sshfl [vmem:[#allocation1 + $0x20] sm:$0xff pattern:$0x73625140] }
 0x3c5   :  { %1731 = vperm.xlu0 %2588, %v1638_v46   ;;  %1643 = vst [vmem:[#allocation1 + $0x20] ss:$4 sm:$0xff] %v3111_v51 }
 0x3c6   :  { %1644 = vst [vmem:[#allocation1 + $0x21] ss:$4 sm:$0xff] %v3114_v55 }
 0x3c7   :  { %1645 = vst [vmem:[#allocation1 + $0x22] ss:$4 sm:$0xff] %v3117_v56 }
 0x3cd   :  { %2589 = vset.pattern.permute.xlu0 %v2718_v2 }
 0x3ce   :  { %1579 = vperm.xlu0 %2589, %v3146_v0   ;;  %v1646_v19 = vld.sshfl [vmem:[#allocation1 + $0x20] sm:$0xff pattern:$0x73625140] }
 0x3cf   :  { %1737 = vperm.xlu1 %2590, %v1646_v19   ;;  %1651 = vst [vmem:[#allocation1 + $0x20] ss:$4 sm:$0xff] %v3111_v51 }
 0x3d0   :  { %1652 = vst [vmem:[#allocation1 + $0x21] ss:$4 sm:$0xff] %v3114_v55 }
 0x3d1   :  { %1653 = vst [vmem:[#allocation1 + $0x22] ss:$4 sm:$0xff] %v3117_v56 }
 0x3d4   :  { %1531 = vperm.xlu2 %2585, %v3111_v51  }
 0x3d6   :  { %2592 = vset.pattern.permute.xlu0 %v2719_v54 }
 0x3d8   :  { %v1654_v20 = vld.sshfl [vmem:[#allocation1 + $0x20] sm:$0xff pattern:$0x73625140] }
 0x3d9   :  { %1743 = vperm.xlu1 %2590, %v1654_v20   ;;  %1659 = vst [vmem:[#allocation1 + $0x20] ss:$4 sm:$0xff] %v3122_v58 }
 0x3da   :  { %1660 = vst [vmem:[#allocation1 + $0x21] ss:$4 sm:$0xff] %v3128_v59 }
 0x3db   :  { %1661 = vst [vmem:[#allocation1 + $0x22] ss:$4 sm:$0xff] %v3133_v39 }
 0x3dc   :  { %1563 = vperm.xlu2 %2585, %v3128_v59  }
 0x3e2   :  { %v1662_v21 = vld.sshfl [vmem:[#allocation1 + $0x20] sm:$0xff pattern:$0x73625140] }
 0x3e3   :  { %1749 = vperm.xlu1 %2590, %v1662_v21   ;;  %1667 = vst [vmem:[#allocation1 + $0x20] ss:$4 sm:$0xff] %v3122_v58 }
 0x3e4   :  { %1668 = vst [vmem:[#allocation1 + $0x21] ss:$4 sm:$0xff] %v3128_v59  ;;  %2591 = vset.pattern.permute.xlu2 %v2719_v54 }
 0x3e5   :  { %1669 = vst [vmem:[#allocation1 + $0x22] ss:$4 sm:$0xff] %v3133_v39 }
 0x3e9   :  { %v1262_v17 = vpop.xlane.xlu2 %1261 }
 0x3ea   :  { %2630 = vrcp.f32 %v1262_v17 }
 0x3ec   :  { %v1670_v22 = vld.sshfl [vmem:[#allocation1 + $0x20] sm:$0xff pattern:$0x73625140] }
 0x3ed   :  { %1755 = vperm.xlu1 %2590, %v1670_v22   ;;  %1675 = vst [vmem:[#allocation1 + $0x20] ss:$4 sm:$0xff] %v3122_v58 }
 0x3ee   :  { %1676 = vst [vmem:[#allocation1 + $0x21] ss:$4 sm:$0xff] %v3128_v59 }
 0x3ef   :  { %1677 = vst [vmem:[#allocation1 + $0x22] ss:$4 sm:$0xff] %v3133_v39 }
 0x3f0   :  { %v2631_v26 = vpop.eup %2630 }
 0x3f1   :  { %v1283_v35 = vperm.slane %v2631_v26, %v3096_v32  ;;  %v1287_v16 = vperm.slane %v2631_v26, %v3098_v33  ;;  %v1291_v29 = vperm.slane %v2631_v26, %v3100_v34 }
 0x3f3   :  { %v1340_v36 = vmul.f32 %v3353_v7, %v1283_v35  ;;  %v1341_v37 = vmul.f32 %v3358_v31, %v1287_v16  ;;  %v1342_v38 = vmul.f32 %v3361_v40, %v1291_v29 }
 0x3f5   :  { %1355 = vst [vmem:[#allocation1] ss:$4 sm:$0xff] %v1340_v36  ;;  %v1265_v48 = vpop.xlane.xlu1 %1264 }
 0x3f6   :  { %v1678_v23 = vld.sshfl [vmem:[#allocation1 + $0x20] sm:$0xff pattern:$0x73625140]  ;;  %1357 = vst [vmem:[#allocation1 + $0x1] ss:$4 sm:$0xff] %v1341_v37  ;;  %2632 = vrcp.f32 %v1265_v48 }
 0x3f7   :  { %1761 = vperm.xlu2 %2591, %v1678_v23   ;;  %1683 = vst [vmem:[#allocation1 + $0x20] ss:$4 sm:$0xff] %v3146_v0 }
 0x3f8   :  { %1684 = vst [vmem:[#allocation1 + $0x21] ss:$4 sm:$0xff] %v3137_v61 }
 0x3f9   :  { %1685 = vst [vmem:[#allocation1 + $0x22] ss:$4 sm:$0xff] %v3156_v10 }
 0x3fa   :  { %1359 = vst [vmem:[#allocation1 + $0x2] ss:$4 sm:$0xff] %v1342_v38 }
 0x3fc   :  { %v2633_v31 = vpop.eup %2632 }
 0x3fd   :  { %v1295_v40 = vperm.slane %v2633_v31, %v3096_v32  ;;  %v1299_v49 = vperm.slane %v2633_v31, %v3098_v33  ;;  %v1303_v44 = vperm.slane %v2633_v31, %v3100_v34 }
 0x3ff   :  { %v1343_v52 = vmul.f32 %v3369_v27, %v1295_v40  ;;  %v1344_v1 = vmul.f32 %v3371_v28, %v1299_v49  ;;  %v1345_v45 = vmul.f32 %v3374_v15, %v1303_v44 }
 0x400   :  { %v1686_v30 = vld.sshfl [vmem:[#allocation1 + $0x20] sm:$0xff pattern:$0x73625140] }
 0x401   :  { %1767 = vperm.xlu2 %2591, %v1686_v30   ;;  %1691 = vst [vmem:[#allocation1 + $0x20] ss:$4 sm:$0xff] %v3146_v0  ;;  %v1360_v7 = vld.sshfl [vmem:[#allocation1] sm:$0xff pattern:$0x73625140] }
 0x402   :  { %1692 = vst [vmem:[#allocation1 + $0x21] ss:$4 sm:$0xff] %v3137_v61 }
 0x403   :  { %1693 = vst [vmem:[#allocation1 + $0x22] ss:$4 sm:$0xff] %v3156_v10 }
 0x404   :  { %1361 = vst [vmem:[#allocation1] ss:$4 sm:$0xff] %v3111_v51 }
 0x405   :  { %1363 = vst [vmem:[#allocation1 + $0x1] ss:$4 sm:$0xff] %v3114_v55 }
 0x406   :  { %1365 = vst [vmem:[#allocation1 + $0x2] ss:$4 sm:$0xff] %v3117_v56 }
 0x40a   :  { %v3456_v53 = vld.sshfl [vmem:[#allocation1 + $0x20] sm:$0xff pattern:$0x73625140] }
 0x40b   :  { %1699 = vst [vmem:[#allocation1 + $0x20] ss:$4 sm:$0xff] %v3146_v0 }
 0x40c   :  { %1700 = vst [vmem:[#allocation1 + $0x21] ss:$4 sm:$0xff] %v3137_v61 }
 0x40d   :  { %1701 = vst [vmem:[#allocation1 + $0x22] ss:$4 sm:$0xff] %v3156_v10  ;;  %v1366_v4 = vld.sshfl [vmem:[#allocation1] sm:$0xff pattern:$0x73625140]  ;;  %v3531_v16 = vpop.permute.xlu1 %1539 }
 0x40e   :  { %1396 = vst [vmem:[#allocation1] ss:$4 sm:$0xff] %v1343_v52  ;;  %2530 = vmatpush.msk.msra.mxu3 %vm1370_vm3, %v1366_v4  ;;  %v1268_v43 = vpop.xlane.xlu0 %1267 }
 0x40f   :  { %1398 = vst [vmem:[#allocation1 + $0x1] ss:$4 sm:$0xff] %v1344_v1  ;;  %2531 = vmatmul.msk.f32.vlgmr.msra.gmra.mxu3 %vm1367_vm4, %v1360_v7  ;;  %2634 = vrcp.f32 %v1268_v43 }
 0x410   :  { %1400 = vst [vmem:[#allocation1 + $0x2] ss:$4 sm:$0xff] %v1345_v45 }
 0x414   :  { %v1702_v50 = vld.sshfl [vmem:[#allocation1 + $0x20] sm:$0xff pattern:$0x73625140] }
 0x415   :  { %1779 = vperm.xlu1 %2590, %v1702_v50   ;;  %1707 = vst [vmem:[#allocation1 + $0x20] ss:$4 sm:$0xff] %v3160_v12  ;;  %v2635_v28 = vpop.eup %2634  ;;  %v3536_v30 = vpop.permute.xlu1 %1555 }
 0x416   :  { %1708 = vst [vmem:[#allocation1 + $0x21] ss:$4 sm:$0xff] %v3203_v24  ;;  %v1307_v15 = vperm.slane %v2635_v28, %v3096_v32  ;;  %v1311_v9 = vperm.slane %v2635_v28, %v3098_v33  ;;  %v1315_v11 = vperm.slane %v2635_v28, %v3100_v34 }
 0x417   :  { %1709 = vst [vmem:[#allocation1 + $0x22] ss:$4 sm:$0xff] %v3206_v25  ;;  %v1401_v27 = vld.sshfl [vmem:[#allocation1] sm:$0xff pattern:$0x73625140] }
 0x418   :  { %1402 = vst [vmem:[#allocation1] ss:$4 sm:$0xff] %v3122_v58  ;;  %v1346_v8 = vmul.f32 %v3385_v60, %v1307_v15  ;;  %v1347_v42 = vmul.f32 %v3387_v62, %v1311_v9  ;;  %v1348_v57 = vmul.f32 %v3390_v63, %v1315_v11 }
 0x419   :  { %1404 = vst [vmem:[#allocation1 + $0x1] ss:$4 sm:$0xff] %v3128_v59 }
 0x41a   :  { %1406 = vst [vmem:[#allocation1 + $0x2] ss:$4 sm:$0xff] %v3133_v39 }
 0x41d   :  { %v3544_v37 = vpop.permute.xlu1 %1571 }
 0x41e   :  { %v3475_v5 = vld.sshfl [vmem:[#allocation1 + $0x20] sm:$0xff pattern:$0x73625140] }
 0x41f   :  { %1715 = vst [vmem:[#allocation1 + $0x20] ss:$4 sm:$0xff] %v3160_v12 }
 0x420   :  { %1716 = vst [vmem:[#allocation1 + $0x21] ss:$4 sm:$0xff] %v3203_v24 }
 0x421   :  { %1717 = vst [vmem:[#allocation1 + $0x22] ss:$4 sm:$0xff] %v3206_v25  ;;  %v1407_v14 = vld.sshfl [vmem:[#allocation1] sm:$0xff pattern:$0x73625140] }
 0x422   :  { %1435 = vst [vmem:[#allocation1] ss:$4 sm:$0xff] %v1346_v8  ;;  %2532 = vmatpush.msk.msrb.mxu3 %vm1370_vm3, %v1407_v14 }
 0x423   :  { %1437 = vst [vmem:[#allocation1 + $0x1] ss:$4 sm:$0xff] %v1347_v42  ;;  %2533 = vmatmul.msk.f32.vlgmr.msrb.gmra.mxu3 %vm1367_vm4, %v1401_v27  ;;  %v1548_v27 = vpop.permute.xlu0 %1547 }
 0x424   :  { %1439 = vst [vmem:[#allocation1 + $0x2] ss:$4 sm:$0xff] %v1348_v57 }
 0x428   :  { %v3486_v41 = vld.sshfl [vmem:[#allocation1 + $0x20] sm:$0xff pattern:$0x73625140] }
 0x429   :  { %1723 = vst [vmem:[#allocation1 + $0x20] ss:$4 sm:$0xff] %v3160_v12 }
 0x42a   :  { %1724 = vst [vmem:[#allocation1 + $0x21] ss:$4 sm:$0xff] %v3203_v24 }
 0x42b   :  { %1725 = vst [vmem:[#allocation1 + $0x22] ss:$4 sm:$0xff] %v3206_v25  ;;  %v1440_v46 = vld.sshfl [vmem:[#allocation1] sm:$0xff pattern:$0x73625140] }
 0x42c   :  { %1441 = vst [vmem:[#allocation1] ss:$4 sm:$0xff] %v3146_v0 }
 0x42d   :  { %1443 = vst [vmem:[#allocation1 + $0x1] ss:$4 sm:$0xff] %v3137_v61 }
 0x42e   :  { %1445 = vst [vmem:[#allocation1 + $0x2] ss:$4 sm:$0xff] %v3156_v10 }
 0x42f   :  { %v1271_v6 = vpop.xlane.xlu2 %1270 }
 0x430   :  { %2636 = vrcp.f32 %v1271_v6 }
 0x432   :  { %v1726_v44 = vld.sshfl [vmem:[#allocation1 + $0x20] sm:$0xff pattern:$0x73625140] }
 0x435   :  { %v1446_v21 = vld.sshfl [vmem:[#allocation1] sm:$0xff pattern:$0x73625140] }
 0x436   :  { %v2637_v60 = vpop.eup %2636  ;;  %2534 = vmatpush.msk.msra.mxu2 %vm1370_vm3, %v1446_v21  ;;  %v1545_v21 = vperm.slane %v3531_v16, %v3096_v32 }
 0x437   :  { %v1319_v62 = vperm.slane %v2637_v60, %v3096_v32  ;;  %v1323_v63 = vperm.slane %v2637_v60, %v3098_v33  ;;  %v1327_v19 = vperm.slane %v2637_v60, %v3100_v34  ;;  %2535 = vmatmul.msk.f32.vlgmr.msra.gmra.mxu2 %vm1367_vm4, %v1440_v46  ;;  %v3550_v48 = vpop.permute.xlu2 %1531  ;;  %v1732_v11 = vpop.permute.xlu0 %1731 }
 0x438   :  { %v1800_v8 = vperm.slane %v1732_v11, %v2745_v3 }
 0x439   :  { %v1349_v20 = vmul.f32 %v3408_v13, %v1319_v62  ;;  %v1350_v22 = vmul.f32 %v3410_v18, %v1323_v63  ;;  %v1351_v23 = vmul.f32 %v3413_v47, %v1327_v19  ;;  %v1537_v63 = vperm.slane %v3550_v48, %v3096_v32 }
 0x43b   :  { %1474 = vst [vmem:[#allocation1] ss:$4 sm:$0xff] %v1349_v20 }
 0x43c   :  { %1476 = vst [vmem:[#allocation1 + $0x1] ss:$4 sm:$0xff] %v1350_v22 }
 0x43d   :  { %1478 = vst [vmem:[#allocation1 + $0x2] ss:$4 sm:$0xff] %v1351_v23 }
 0x441   :  { %v1738_v7 = vpop.permute.xlu1 %1737 }
 0x442   :  { %v1802_v57 = vperm.slane %v1738_v7, %v2745_v3 }
 0x444   :  { %v1479_v17 = vld.sshfl [vmem:[#allocation1] sm:$0xff pattern:$0x73625140] }
 0x445   :  { %1480 = vst [vmem:[#allocation1] ss:$4 sm:$0xff] %v3160_v12 }
 0x446   :  { %1482 = vst [vmem:[#allocation1 + $0x1] ss:$4 sm:$0xff] %v3203_v24 }
 0x447   :  { %1484 = vst [vmem:[#allocation1 + $0x2] ss:$4 sm:$0xff] %v3206_v25 }
 0x44b   :  { %v1744_v40 = vpop.permute.xlu1 %1743 }
 0x44c   :  { %v1804_v60 = vperm.slane %v1744_v40, %v2745_v3 }
 0x44e   :  { %v1485_v13 = vld.sshfl [vmem:[#allocation1] sm:$0xff pattern:$0x73625140] }
 0x44f   :  { %1626 = vst [vmem:[#allocation1] ss:$4 sm:$0xff] %v3111_v51  ;;  %2536 = vmatpush.msk.msra.mxu3 %vm1370_vm3, %v1485_v13 }
 0x450   :  { %1628 = vst [vmem:[#allocation1 + $0x1] ss:$4 sm:$0xff] %v3114_v55  ;;  %2537 = vmatmul.msk.f32.vlgmr.msra.gmra.mxu3 %vm1367_vm4, %v1479_v17 }
 0x451   :  { %1630 = vst [vmem:[#allocation1 + $0x2] ss:$4 sm:$0xff] %v3117_v56 }
 0x455   :  { %v3566_v52 = vpop.permute.xlu1 %1749 }
 0x456   :  { %v1806_v7 = vperm.slane %v3566_v52, %v2745_v3 }
 0x458   :  { %v1631_v18 = vld.sshfl [vmem:[#allocation1] sm:$0xff pattern:$0x73625140] }
 0x459   :  { %1639 = vst [vmem:[#allocation1] ss:$4 sm:$0xff] %v3111_v51  ;;  %1728 = vperm.xlu1 %2590, %v1631_v18  }
 0x45a   :  { %1640 = vst [vmem:[#allocation1 + $0x1] ss:$4 sm:$0xff] %v3114_v55 }
 0x45b   :  { %1641 = vst [vmem:[#allocation1 + $0x2] ss:$4 sm:$0xff] %v3117_v56 }
 0x45f   :  { %v1756_v45 = vpop.permute.xlu1 %1755 }
 0x461   :  { %2594 = vset.pattern.permute.xlu1 %v2718_v2 }
 0x462   :  { %v1642_v47 = vld.sshfl [vmem:[#allocation1] sm:$0xff pattern:$0x73625140]  ;;  %1595 = vperm.xlu1 %2594, %v3156_v10  }
 0x463   :  { %1647 = vst [vmem:[#allocation1] ss:$4 sm:$0xff] %v3111_v51  ;;  %1734 = vperm.xlu2 %2591, %v1642_v47  }
 0x464   :  { %1648 = vst [vmem:[#allocation1 + $0x1] ss:$4 sm:$0xff] %v3114_v55 }
 0x465   :  { %1649 = vst [vmem:[#allocation1 + $0x2] ss:$4 sm:$0xff] %v3117_v56 }
 0x46a   :  { %2595 = vset.pattern.permute.xlu1 %v2719_v54 }
 0x46b   :  { %1785 = vperm.xlu1 %2595, %v3475_v5  }
 0x46c   :  { %v1650_v26 = vld.sshfl [vmem:[#allocation1] sm:$0xff pattern:$0x73625140] }
 0x46d   :  { %1740 = vperm.xlu2 %2591, %v1650_v26   ;;  %1655 = vst [vmem:[#allocation1] ss:$4 sm:$0xff] %v3122_v58 }
 0x46e   :  { %1656 = vst [vmem:[#allocation1 + $0x1] ss:$4 sm:$0xff] %v3128_v59 }
 0x46f   :  { %1657 = vst [vmem:[#allocation1 + $0x2] ss:$4 sm:$0xff] %v3133_v39 }
 0x476   :  { %v1658_v35 = vld.sshfl [vmem:[#allocation1] sm:$0xff pattern:$0x73625140] }
 0x477   :  { %1746 = vperm.xlu2 %2591, %v1658_v35   ;;  %1663 = vst [vmem:[#allocation1] ss:$4 sm:$0xff] %v3122_v58 }
 0x478   :  { %1664 = vst [vmem:[#allocation1 + $0x1] ss:$4 sm:$0xff] %v3128_v59 }
 0x479   :  { %1665 = vst [vmem:[#allocation1 + $0x2] ss:$4 sm:$0xff] %v3133_v39 }
 0x480   :  { %v1666_v29 = vld.sshfl [vmem:[#allocation1] sm:$0xff pattern:$0x73625140] }
 0x481   :  { %1752 = vperm.xlu2 %2591, %v1666_v29   ;;  %1671 = vst [vmem:[#allocation1] ss:$4 sm:$0xff] %v3122_v58 }
 0x482   :  { %1672 = vst [vmem:[#allocation1 + $0x1] ss:$4 sm:$0xff] %v3128_v59 }
 0x483   :  { %1673 = vst [vmem:[#allocation1 + $0x2] ss:$4 sm:$0xff] %v3133_v39 }
 0x487   :  { %v3578_v28 = vpop.permute.xlu1 %1779 }
 0x489   :  { %2593 = vset.pattern.permute.xlu2 %v2718_v2 }
 0x48a   :  { %v1674_v36 = vld.sshfl [vmem:[#allocation1] sm:$0xff pattern:$0x73625140]  ;;  %1587 = vperm.xlu2 %2593, %v3137_v61  }
 0x48b   :  { %1758 = vperm.xlu0 %2592, %v1674_v36   ;;  %1679 = vst [vmem:[#allocation1] ss:$4 sm:$0xff] %v3146_v0 }
 0x48c   :  { %1680 = vst [vmem:[#allocation1 + $0x1] ss:$4 sm:$0xff] %v3137_v61 }
 0x48d   :  { %1681 = vst [vmem:[#allocation1 + $0x2] ss:$4 sm:$0xff] %v3156_v10 }
 0x492   :  { %2596 = vset.pattern.permute.xlu2 %v2719_v54 }
 0x493   :  { %1773 = vperm.xlu0 %2592, %v3456_v53   ;;  %1791 = vperm.xlu2 %2596, %v3486_v41   ;;  %v3555_v53 = vpop.permute.xlu2 %1563 }
 0x494   :  { %v1682_v38 = vld.sshfl [vmem:[#allocation1] sm:$0xff pattern:$0x73625140] }
 0x495   :  { %1687 = vst [vmem:[#allocation1] ss:$4 sm:$0xff] %v3146_v0 }
 0x496   :  { %1688 = vst [vmem:[#allocation1 + $0x1] ss:$4 sm:$0xff] %v3137_v61 }
 0x497   :  { %1689 = vst [vmem:[#allocation1 + $0x2] ss:$4 sm:$0xff] %v3156_v10 }
 0x49b   :  { %1764 = vperm.xlu0 %2592, %v1682_v38   ;;  %v3562_v50 = vpop.permute.xlu2 %1761 }
 0x49c   :  { %v1810_v11 = vperm.slane %v3562_v50, %v2745_v3 }
 0x49e   :  { %v1690_v31 = vld.sshfl [vmem:[#allocation1] sm:$0xff pattern:$0x73625140] }
 0x49f   :  { %1770 = vperm.xlu1 %2595, %v1690_v31   ;;  %1695 = vst [vmem:[#allocation1] ss:$4 sm:$0xff] %v3146_v0 }
 0x4a0   :  { %1696 = vst [vmem:[#allocation1 + $0x1] ss:$4 sm:$0xff] %v3137_v61 }
 0x4a1   :  { %1697 = vst [vmem:[#allocation1 + $0x2] ss:$4 sm:$0xff] %v3156_v10 }
 0x4a3   :  { %v3570_v1 = vpop.permute.xlu2 %1767 }
 0x4a7   :  { %2597 = vset.pattern.permute.xlu1 %v2718_v2 }
 0x4a8   :  { %v1698_v49 = vld.sshfl [vmem:[#allocation1] sm:$0xff pattern:$0x73625140]  ;;  %1603 = vperm.xlu1 %2597, %v3160_v12  }
 0x4a9   :  { %1776 = vperm.xlu2 %2596, %v1698_v49   ;;  %1703 = vst [vmem:[#allocation1] ss:$4 sm:$0xff] %v3160_v12  ;;  %v1808_v49 = vperm.slane %v1756_v45, %v2745_v3  ;;  %v1561_v45 = vperm.slane %v3536_v30, %v3096_v32 }
 0x4aa   :  { %1704 = vst [vmem:[#allocation1 + $0x1] ss:$4 sm:$0xff] %v3203_v24 }
 0x4ab   :  { %1705 = vst [vmem:[#allocation1 + $0x2] ss:$4 sm:$0xff] %v3206_v25 }
 0x4b0   :  { %2600 = vset.pattern.permute.xlu1 %v2719_v54 }
 0x4b1   :  { %1797 = vperm.xlu2 %2596, %v1726_v44  }
 0x4b2   :  { %v1706_v4 = vld.sshfl [vmem:[#allocation1] sm:$0xff pattern:$0x73625140] }
 0x4b3   :  { %1711 = vst [vmem:[#allocation1] ss:$4 sm:$0xff] %v3160_v12 }
 0x4b4   :  { %1712 = vst [vmem:[#allocation1 + $0x1] ss:$4 sm:$0xff] %v3203_v24 }
 0x4b5   :  { %1713 = vst [vmem:[#allocation1 + $0x2] ss:$4 sm:$0xff] %v3206_v25 }
 0x4b9   :  { %1782 = vperm.xlu2 %2596, %v1706_v4  }
 0x4bc   :  { %v1714_v43 = vld.sshfl [vmem:[#allocation1] sm:$0xff pattern:$0x73625140] }
 0x4bd   :  { %1788 = vperm.xlu0 %2592, %v1714_v43   ;;  %1719 = vst [vmem:[#allocation1] ss:$4 sm:$0xff] %v3160_v12  ;;  %v1735_v5 = vpop.permute.xlu2 %1734 }
 0x4be   :  { %1720 = vst [vmem:[#allocation1 + $0x1] ss:$4 sm:$0xff] %v3203_v24  ;;  %v1801_v42 = vperm.slane %v1735_v5, %v2745_v3 }
 0x4bf   :  { %1721 = vst [vmem:[#allocation1 + $0x2] ss:$4 sm:$0xff] %v3206_v25 }
 0x4c1   :  { %2599 = vset.pattern.permute.xlu2 %v2718_v2 }
 0x4c2   :  { %1619 = vperm.xlu2 %2599, %v3206_v25  }
 0x4c5   :  { %2598 = vset.pattern.permute.xlu0 %v2718_v2 }
 0x4c6   :  { %v1722_v15 = vld.sshfl [vmem:[#allocation1] sm:$0xff pattern:$0x73625140]  ;;  %1611 = vperm.xlu0 %2598, %v3203_v24  }
 0x4c7   :  { %1794 = vperm.xlu1 %2600, %v1722_v15   ;;  %v1741_v9 = vpop.permute.xlu2 %1740  ;;  %v1580_v15 = vpop.permute.xlu0 %1579 }
 0x4c8   :  { %v1803_v2 = vperm.slane %v1741_v9, %v2745_v3 }
 0x4cb   :  { %v1729_v41 = vpop.permute.xlu1 %1728 }
 0x4cc   :  { %v1799_v14 = vperm.slane %v1729_v41, %v2745_v3 }
 0x4ce   :  { %v1823_v6 = vsel %vm119_vm14, %v1800_v8, %v1799_v14  ;;  %2601 = vset.pattern.permute.xlu0 %v2719_v54  ;;  %v1553_v54 = vperm.slane %v1548_v27, %v3096_v32 }
 0x4cf   :  { %v1824_v46 = vsel %vm121_vm15, %v1801_v42, %v1823_v6  ;;  %v1577_v42 = vperm.slane %v3544_v37, %v3096_v32  ;;  %v1569_v6 = vperm.slane %v3555_v53, %v3096_v32 }
 0x4d0   :  { %v1825_v62 = vsel %vm123_vm0, %v1802_v57, %v1824_v46 }
 0x4d1   :  { %v1747_v19 = vpop.permute.xlu2 %1746  ;;  %v1826_v20 = vsel %vm125_vm1, %v1803_v2, %v1825_v62 }
 0x4d2   :  { %v1827_v22 = vsel %vm127_vm2, %v1804_v60, %v1826_v20  ;;  %v1805_v38 = vperm.slane %v1747_v19, %v2745_v3 }
 0x4d3   :  { %v1843_v23 = vrot.slane %v1827_v22, 2  ;;  %v1844_v17 = vrot.slane %v1827_v22, 4  ;;  %v1863_v13 = vadd.f32 %v1827_v22, %v1537_v63 }
 0x4d4   :  { %v1828_v44 = vsel %vm119_vm14, %v1806_v7, %v1805_v38  ;;  %v1596_v41 = vpop.permute.xlu1 %1595 }
 0x4d5   :  { %v1864_v18 = vadd.f32 %v1843_v23, %v1545_v21  ;;  %v1865_v47 = vadd.f32 %v1844_v17, %v1553_v54  ;;  %vm1875_vm6 = vcmp.gt.f32.partialorder %v1863_v13, 0.0  ;;  %v1887_v26 = vmul.f32 0.2, %v1863_v13 }
 0x4d7   :  { %vm1876_vm7 = vcmp.gt.f32.partialorder %v1864_v18, 0.0  ;;  %vm1877_vm8 = vcmp.gt.f32.partialorder %v1865_v47, 0.0  ;;  %v1888_v35 = vmul.f32 0.2, %v1864_v18  ;;  %v1889_v29 = vmul.f32 0.2, %v1865_v47 }
 0x4d8   :  { %v3599_v36 = vsel %vm1875_vm6, %v1863_v13, %v1887_v26  ;;  %v1812_v13 = vperm.slane %v3570_v1, %v2745_v3 }
 0x4d9   :  { %v3602_v16 = vsel %vm1876_vm7, %v1864_v18, %v1888_v35  ;;  %v3604_v48 = vsel %vm1877_vm8, %v1865_v47, %v1889_v29  ;;  %1923 = vst [vmem:[#allocation1] ss:$4 sm:$0xff] %v3599_v36 }
 0x4da   :  { %1925 = vst [vmem:[#allocation1 + $0x1] ss:$4 sm:$0xff] %v3602_v16 }
 0x4db   :  { %1927 = vst [vmem:[#allocation1 + $0x2] ss:$4 sm:$0xff] %v3604_v48  ;;  %v1753_v31 = vpop.permute.xlu2 %1752 }
 0x4dc   :  { %v1807_v40 = vperm.slane %v1753_v31, %v2745_v3 }
 0x4dd   :  { %v1786_v53 = vpop.permute.xlu1 %1785 }
 0x4de   :  { %v1829_v4 = vsel %vm121_vm15, %v1807_v40, %v1828_v44  ;;  %v1585_v44 = vperm.slane %v1580_v15, %v3096_v32 }
 0x4df   :  { %v1830_v43 = vsel %vm123_vm0, %v1808_v49, %v1829_v4  ;;  %v1816_v49 = vperm.slane %v3578_v28, %v2745_v3 }
 0x4e2   :  { %v1928_v5 = vld.sshfl [vmem:[#allocation1] sm:$0xff pattern:$0x73625140] }
 0x4e3   :  { %v1948_v27 = vsel %vm1110_vm5, %v1928_v5, -inf }
 0x4e4   :  { %v1588_v8 = vpop.permute.xlu2 %1587 }
 0x4ed   :  { %v1792_v54 = vpop.permute.xlu2 %1791 }
 0x4f1   :  { %1949 = vmax.xlane.f32.xlu1 %v1948_v27  ;;  %v1593_v27 = vperm.slane %v1588_v8, %v3096_v32 }
 0x4fd   :  { %v1759_v9 = vpop.permute.xlu0 %1758 }
 0x4fe   :  { %v1809_v52 = vperm.slane %v1759_v9, %v2745_v3 }
 0x500   :  { %v1831_v14 = vsel %vm125_vm1, %v1809_v52, %v1830_v43  ;;  %v1601_v43 = vperm.slane %v1596_v41, %v3096_v32 }
 0x501   :  { %v1832_v57 = vsel %vm127_vm2, %v1810_v11, %v1831_v14 }
 0x502   :  { %v1845_v2 = vrot.slane %v1832_v57, 2  ;;  %v1846_v46 = vrot.slane %v1832_v57, 4  ;;  %v1866_v60 = vadd.f32 %v1832_v57, %v1561_v45 }
 0x503   :  { %v1777_v18 = vpop.permute.xlu2 %1776 }
 0x504   :  { %v1867_v62 = vadd.f32 %v1845_v2, %v1569_v6  ;;  %v1868_v50 = vadd.f32 %v1846_v46, %v1577_v42  ;;  %vm1878_vm9 = vcmp.gt.f32.partialorder %v1866_v60, 0.0  ;;  %v1890_v63 = vmul.f32 0.2, %v1866_v60 }
 0x505   :  { %v1774_v19 = vpop.permute.xlu0 %1773  ;;  %v1815_v31 = vperm.slane %v1777_v18, %v2745_v3 }
 0x506   :  { %vm1879_vm10 = vcmp.gt.f32.partialorder %v1867_v62, 0.0  ;;  %vm1880_vm11 = vcmp.gt.f32.partialorder %v1868_v50, 0.0  ;;  %v1891_v30 = vmul.f32 0.2, %v1867_v62  ;;  %v1892_v20 = vmul.f32 0.2, %v1868_v50 }
 0x507   :  { %v3628_v21 = vsel %vm1878_vm9, %v1866_v60, %v1890_v63  ;;  %v1814_v7 = vperm.slane %v1774_v19, %v2745_v3  ;;  %vm2395_vm9 = vcmask 1047556  }
 0x508   :  { %v3630_v37 = vsel %vm1879_vm10, %v1867_v62, %v1891_v30  ;;  %v3632_v22 = vsel %vm1880_vm11, %v1868_v50, %v1892_v20  ;;  %1930 = vst [vmem:[#allocation1 + $0x20] ss:$4 sm:$0xff] %v3628_v21  ;;  %v1818_v30 = vperm.slane %v1786_v53, %v2745_v3 }
 0x509   :  { %1932 = vst [vmem:[#allocation1 + $0x21] ss:$4 sm:$0xff] %v3630_v37 }
 0x50a   :  { %1934 = vst [vmem:[#allocation1 + $0x22] ss:$4 sm:$0xff] %v3632_v22 }
 0x50b   :  { %v1798_v8 = vpop.permute.xlu2 %1797 }
 0x50d   :  { %v1765_v23 = vpop.permute.xlu0 %1764 }
 0x50e   :  { %v1811_v17 = vperm.slane %v1765_v23, %v2745_v3 }
 0x510   :  { %v1833_v47 = vsel %vm119_vm14, %v1812_v13, %v1811_v17  ;;  %v1820_v17 = vperm.slane %v1792_v54, %v2745_v3 }
 0x511   :  { %v1771_v26 = vpop.permute.xlu1 %1770  ;;  %v1935_v35 = vld.sshfl [vmem:[#allocation1 + $0x20] sm:$0xff pattern:$0x73625140] }
 0x512   :  { %v1813_v29 = vperm.slane %v1771_v26, %v2745_v3  ;;  %v1951_v38 = vsel %vm1110_vm5, %v1935_v35, -inf  ;;  %v1822_v26 = vperm.slane %v1798_v8, %v2745_v3 }
 0x513   :  { %1952 = vmax.xlane.f32.xlu2 %v1951_v38  ;;  %v1783_v60 = vpop.permute.xlu2 %1782 }
 0x514   :  { %v1834_v40 = vsel %vm121_vm15, %v1813_v29, %v1833_v47  ;;  %v1817_v63 = vperm.slane %v1783_v60, %v2745_v3 }
 0x515   :  { %v1835_v1 = vsel %vm123_vm0, %v1814_v7, %v1834_v40 }
 0x516   :  { %v1836_v4 = vsel %vm125_vm1, %v1815_v31, %v1835_v1  ;;  %v1838_v20 = vsel %vm119_vm14, %v1818_v30, %v1817_v63 }
 0x517   :  { %v1837_v5 = vsel %vm127_vm2, %v1816_v49, %v1836_v4 }
 0x518   :  { %v1847_v9 = vrot.slane %v1837_v5, 2  ;;  %v1848_v52 = vrot.slane %v1837_v5, 4  ;;  %v1869_v11 = vadd.f32 %v1837_v5, %v1585_v44 }
 0x51a   :  { %v1870_v45 = vadd.f32 %v1847_v9, %v1593_v27  ;;  %v1871_v14 = vadd.f32 %v1848_v52, %v1601_v43  ;;  %vm1881_vm12 = vcmp.gt.f32.partialorder %v1869_v11, 0.0  ;;  %v1893_v42 = vmul.f32 0.2, %v1869_v11  ;;  %v1604_v62 = vpop.permute.xlu1 %1603 }
 0x51b   :  { %v1609_v38 = vperm.slane %v1604_v62, %v3096_v32 }
 0x51c   :  { %vm1882_vm13 = vcmp.gt.f32.partialorder %v1870_v45, 0.0  ;;  %vm1883_vm6 = vcmp.gt.f32.partialorder %v1871_v14, 0.0  ;;  %v1894_v28 = vmul.f32 0.2, %v1870_v45  ;;  %v1895_v57 = vmul.f32 0.2, %v1871_v14  ;;  %v1620_v18 = vpop.permute.xlu2 %1619 }
 0x51d   :  { %v3654_v15 = vsel %vm1881_vm12, %v1869_v11, %v1893_v42  ;;  %v1625_v53 = vperm.slane %v1620_v18, %v3096_v32  ;;  %vm2463_vm12 = vcmask 130048  }
 0x51e   :  { %v3656_v6 = vsel %vm1882_vm13, %v1870_v45, %v1894_v28  ;;  %v3658_v41 = vsel %vm1883_vm6, %v1871_v14, %v1895_v57  ;;  %1936 = vst [vmem:[#allocation1] ss:$4 sm:$0xff] %v3654_v15  ;;  %vm2465_vm13 = vcmask 261120   ;;  %vm2467_vm6 = vcmask 392192  }
 0x51f   :  { %1937 = vst [vmem:[#allocation1 + $0x1] ss:$4 sm:$0xff] %v3656_v6 }
 0x520   :  { %1938 = vst [vmem:[#allocation1 + $0x2] ss:$4 sm:$0xff] %v3658_v41 }
 0x527   :  { %v1939_v2 = vld.sshfl [vmem:[#allocation1] sm:$0xff pattern:$0x73625140] }
 0x528   :  { %v1954_v46 = vsel %vm1110_vm5, %v1939_v2, -inf }
 0x529   :  { %1955 = vmax.xlane.f32.xlu0 %v1954_v46 }
 0x52f   :  { %v1789_v50 = vpop.permute.xlu0 %1788 }
 0x530   :  { %v1819_v19 = vperm.slane %v1789_v50, %v2745_v3 }
 0x532   :  { %v1839_v23 = vsel %vm121_vm15, %v1819_v19, %v1838_v20 }
 0x533   :  { %v1840_v35 = vsel %vm123_vm0, %v1820_v17, %v1839_v23 }
 0x538   :  { %v1612_v29 = vpop.permute.xlu0 %1611 }
 0x539   :  { %v1795_v13 = vpop.permute.xlu1 %1794  ;;  %v1617_v40 = vperm.slane %v1612_v29, %v3096_v32 }
 0x53a   :  { %v1821_v47 = vperm.slane %v1795_v13, %v2745_v3 }
 0x53c   :  { %v1841_v7 = vsel %vm125_vm1, %v1821_v47, %v1840_v35 }
 0x53d   :  { %v1842_v31 = vsel %vm127_vm2, %v1822_v26, %v1841_v7 }
 0x53e   :  { %v1849_v54 = vrot.slane %v1842_v31, 2  ;;  %v1850_v49 = vrot.slane %v1842_v31, 4  ;;  %v1872_v1 = vadd.f32 %v1842_v31, %v1609_v38 }
 0x540   :  { %v1873_v44 = vadd.f32 %v1849_v54, %v1617_v40  ;;  %v1874_v4 = vadd.f32 %v1850_v49, %v1625_v53  ;;  %vm1884_vm14 = vcmp.gt.f32.partialorder %v1872_v1, 0.0  ;;  %v1896_v3 = vmul.f32 0.2, %v1872_v1 }
 0x542   :  { %vm1885_vm15 = vcmp.gt.f32.partialorder %v1873_v44, 0.0  ;;  %vm1886_vm0 = vcmp.gt.f32.partialorder %v1874_v4, 0.0  ;;  %v1897_v43 = vmul.f32 0.2, %v1873_v44  ;;  %v1898_v5 = vmul.f32 0.2, %v1874_v4 }
 0x543   :  { %v3678_v27 = vsel %vm1884_vm14, %v1872_v1, %v1896_v3  ;;  %vm2469_vm14 = vcmask 523264  }
 0x544   :  { %v3680_v9 = vsel %vm1885_vm15, %v1873_v44, %v1897_v43  ;;  %v3682_v52 = vsel %vm1886_vm0, %v1874_v4, %v1898_v5  ;;  %1940 = vst [vmem:[#allocation1 + $0x20] ss:$4 sm:$0xff] %v3678_v27  ;;  %vm2471_vm15 = vcmask 654336   ;;  %vm2487_vm0 = vcmask 785408  }
 0x545   :  { %1941 = vst [vmem:[#allocation1 + $0x21] ss:$4 sm:$0xff] %v3680_v9 }
 0x546   :  { %1942 = vst [vmem:[#allocation1 + $0x22] ss:$4 sm:$0xff] %v3682_v52 }
 0x54d   :  { %v1943_v11 = vld.sshfl [vmem:[#allocation1 + $0x20] sm:$0xff pattern:$0x73625140] }
 0x54e   :  { %v1957_v45 = vsel %vm1110_vm5, %v1943_v11, -inf }
 0x54f   :  { %1958 = vmax.xlane.f32.xlu1 %v1957_v45 }
 0x564   :  { %v1950_v14 = vpop.xlane.xlu1 %1949 }
 0x565   :  { %v1967_v42 = vperm.slane %v1950_v14, %v3096_v32  ;;  %v1971_v28 = vperm.slane %v1950_v14, %v3098_v33  ;;  %v1975_v57 = vperm.slane %v1950_v14, %v3100_v34 }
 0x567   :  { %v2024_v8 = vsub.f32 %v3599_v36, %v1967_v42  ;;  %v2025_v2 = vsub.f32 %v3602_v16, %v1971_v28  ;;  %v2026_v46 = vsub.f32 %v3604_v48, %v1975_v57 }
 0x569   :  { %v2036_v60 = vmul.f32 1.442695, %v2024_v8  ;;  %v2038_v62 = vmul.f32 1.442695, %v2025_v2  ;;  %v2040_v50 = vmul.f32 1.442695, %v2026_v46 }
 0x56b   :  { %2638 = vpow2.f32 %v2036_v60 }
 0x56c   :  { %2640 = vpow2.f32 %v2038_v62 }
 0x56d   :  { %2642 = vpow2.f32 %v2040_v50 }
 0x571   :  { %v3694_v63 = vpop.eup %2638 }
 0x572   :  { %v3696_v19 = vpop.eup %2640  ;;  %2072 = vst [vmem:[#allocation1] ss:$4 sm:$0xff] %v3694_v63 }
 0x573   :  { %v3699_v30 = vpop.eup %2642  ;;  %2074 = vst [vmem:[#allocation1 + $0x1] ss:$4 sm:$0xff] %v3696_v19 }
 0x574   :  { %2076 = vst [vmem:[#allocation1 + $0x2] ss:$4 sm:$0xff] %v3699_v30 }
 0x57b   :  { %v2077_v36 = vld.sshfl [vmem:[#allocation1] sm:$0xff pattern:$0x73625140] }
 0x57c   :  { %v2097_v16 = vsel %vm1110_vm5, %v2077_v36, 0.0 }
 0x57d   :  { %2098 = vadd.xlane.f32.xlu2 %v2097_v16 }
 0x586   :  { %v1953_v48 = vpop.xlane.xlu2 %1952 }
 0x587   :  { %v1979_v20 = vperm.slane %v1953_v48, %v3096_v32  ;;  %v1983_v23 = vperm.slane %v1953_v48, %v3098_v33  ;;  %v1987_v17 = vperm.slane %v1953_v48, %v3100_v34 }
 0x589   :  { %v2027_v13 = vsub.f32 %v3628_v21, %v1979_v20  ;;  %v2028_v18 = vsub.f32 %v3630_v37, %v1983_v23  ;;  %v2029_v47 = vsub.f32 %v3632_v22, %v1987_v17 }
 0x58b   :  { %v2042_v26 = vmul.f32 1.442695, %v2027_v13  ;;  %v2044_v35 = vmul.f32 1.442695, %v2028_v18  ;;  %v2046_v29 = vmul.f32 1.442695, %v2029_v47 }
 0x58d   :  { %2644 = vpow2.f32 %v2042_v26 }
 0x58e   :  { %2646 = vpow2.f32 %v2044_v35 }
 0x58f   :  { %2648 = vpow2.f32 %v2046_v29 }
 0x593   :  { %v3710_v38 = vpop.eup %2644 }
 0x594   :  { %v3712_v7 = vpop.eup %2646  ;;  %2079 = vst [vmem:[#allocation1 + $0x20] ss:$4 sm:$0xff] %v3710_v38 }
 0x595   :  { %v3715_v53 = vpop.eup %2648  ;;  %2081 = vst [vmem:[#allocation1 + $0x21] ss:$4 sm:$0xff] %v3712_v7 }
 0x596   :  { %2083 = vst [vmem:[#allocation1 + $0x22] ss:$4 sm:$0xff] %v3715_v53 }
 0x59c   :  { %v1956_v21 = vpop.xlane.xlu0 %1955 }
 0x59d   :  { %v1991_v37 = vperm.slane %v1956_v21, %v3096_v32  ;;  %v1995_v22 = vperm.slane %v1956_v21, %v3098_v33  ;;  %v1999_v31 = vperm.slane %v1956_v21, %v3100_v34  ;;  %v2084_v40 = vld.sshfl [vmem:[#allocation1 + $0x20] sm:$0xff pattern:$0x73625140] }
 0x59e   :  { %v2100_v54 = vsel %vm1110_vm5, %v2084_v40, 0.0 }
 0x59f   :  { %v2030_v49 = vsub.f32 %v3654_v15, %v1991_v37  ;;  %v2031_v1 = vsub.f32 %v3656_v6, %v1995_v22  ;;  %v2032_v44 = vsub.f32 %v3658_v41, %v1999_v31  ;;  %2101 = vadd.xlane.f32.xlu1 %v2100_v54 }
 0x5a1   :  { %v2048_v4 = vmul.f32 1.442695, %v2030_v49  ;;  %v2050_v3 = vmul.f32 1.442695, %v2031_v1  ;;  %v2052_v43 = vmul.f32 1.442695, %v2032_v44 }
 0x5a3   :  { %2650 = vpow2.f32 %v2048_v4 }
 0x5a4   :  { %2652 = vpow2.f32 %v2050_v3 }
 0x5a5   :  { %2654 = vpow2.f32 %v2052_v43 }
 0x5a9   :  { %v3726_v5 = vpop.eup %2650 }
 0x5aa   :  { %v3728_v11 = vpop.eup %2652  ;;  %2085 = vst [vmem:[#allocation1] ss:$4 sm:$0xff] %v3726_v5 }
 0x5ab   :  { %v3731_v45 = vpop.eup %2654  ;;  %2086 = vst [vmem:[#allocation1 + $0x1] ss:$4 sm:$0xff] %v3728_v11 }
 0x5ac   :  { %2087 = vst [vmem:[#allocation1 + $0x2] ss:$4 sm:$0xff] %v3731_v45 }
 0x5b3   :  { %v2088_v15 = vld.sshfl [vmem:[#allocation1] sm:$0xff pattern:$0x73625140] }
 0x5b4   :  { %v2103_v6 = vsel %vm1110_vm5, %v2088_v15, 0.0 }
 0x5b5   :  { %2104 = vadd.xlane.f32.xlu2 %v2103_v6 }
 0x5c2   :  { %v1959_v41 = vpop.xlane.xlu1 %1958 }
 0x5c3   :  { %v2003_v14 = vperm.slane %v1959_v41, %v3096_v32  ;;  %v2007_v42 = vperm.slane %v1959_v41, %v3098_v33  ;;  %v2011_v28 = vperm.slane %v1959_v41, %v3100_v34 }
 0x5c5   :  { %v2033_v57 = vsub.f32 %v3678_v27, %v2003_v14  ;;  %v2034_v8 = vsub.f32 %v3680_v9, %v2007_v42  ;;  %v2035_v2 = vsub.f32 %v3682_v52, %v2011_v28  ;;  %v1468_v28 = vpop.f32.mrf.mxu2 }
 0x5c6   :  { %vm1512_vm11 = vcmp.gt.f32.partialorder %v1468_v28, 0.0 }
 0x5c7   :  { %v2054_v46 = vmul.f32 1.442695, %v2033_v57  ;;  %v2056_v60 = vmul.f32 1.442695, %v2034_v8  ;;  %v2058_v62 = vmul.f32 1.442695, %v2035_v2 }
 0x5c9   :  { %2656 = vpow2.f32 %v2054_v46 }
 0x5ca   :  { %2658 = vpow2.f32 %v2056_v60 }
 0x5cb   :  { %2660 = vpow2.f32 %v2058_v62 }
 0x5cf   :  { %v3742_v50 = vpop.eup %2656 }
 0x5d0   :  { %v3744_v36 = vpop.eup %2658  ;;  %2089 = vst [vmem:[#allocation1 + $0x20] ss:$4 sm:$0xff] %v3742_v50 }
 0x5d1   :  { %v3747_v16 = vpop.eup %2660  ;;  %2090 = vst [vmem:[#allocation1 + $0x21] ss:$4 sm:$0xff] %v3744_v36 }
 0x5d2   :  { %2091 = vst [vmem:[#allocation1 + $0x22] ss:$4 sm:$0xff] %v3747_v16 }
 0x5d9   :  { %v2092_v27 = vld.sshfl [vmem:[#allocation1 + $0x20] sm:$0xff pattern:$0x73625140] }
 0x5da   :  { %v2106_v9 = vsel %vm1110_vm5, %v2092_v27, 0.0 }
 0x5db   :  { %2107 = vadd.xlane.f32.xlu0 %v2106_v9 }
 0x5f0   :  { %v2099_v52 = vpop.xlane.xlu2 %2098 }
 0x5f1   :  { %2662 = vrcp.f32 %v2099_v52 }
 0x5f7   :  { %v2663_v48 = vpop.eup %2662 }
 0x5f8   :  { %v2120_v20 = vperm.slane %v2663_v48, %v3096_v32  ;;  %v2124_v23 = vperm.slane %v2663_v48, %v3098_v33  ;;  %v2128_v17 = vperm.slane %v2663_v48, %v3100_v34 }
 0x5fa   :  { %v2177_v13 = vmul.f32 %v3694_v63, %v2120_v20  ;;  %v2178_v18 = vmul.f32 %v3696_v19, %v2124_v23  ;;  %v2179_v47 = vmul.f32 %v3699_v30, %v2128_v17 }
 0x5fc   :  { %2192 = vst [vmem:[#allocation1] ss:$4 sm:$0xff] %v2177_v13 }
 0x5fd   :  { %2194 = vst [vmem:[#allocation1 + $0x1] ss:$4 sm:$0xff] %v2178_v18 }
 0x5fe   :  { %2196 = vst [vmem:[#allocation1 + $0x2] ss:$4 sm:$0xff] %v2179_v47  ;;  %v1518_v47 = vmul.f32 1.442695, %v1468_v28 }
 0x605   :  { %v2197_v26 = vld.sshfl [vmem:[#allocation1] sm:$0xff pattern:$0x73625140] }
 0x606   :  { %2198 = vst [vmem:[#allocation1] ss:$4 sm:$0xff] %v3111_v51 }
 0x607   :  { %2200 = vst [vmem:[#allocation1 + $0x1] ss:$4 sm:$0xff] %v3114_v55 }
 0x608   :  { %2202 = vst [vmem:[#allocation1 + $0x2] ss:$4 sm:$0xff] %v3117_v56 }
 0x60f   :  { %v2203_v35 = vld.sshfl [vmem:[#allocation1] sm:$0xff pattern:$0x73625140] }
 0x610   :  { %2204 = vrot.lane.b32.xlu2 %v2203_v35, %s2720_s30 }
 0x612   :  { %v2102_v29 = vpop.xlane.xlu1 %2101 }
 0x613   :  { %2664 = vrcp.f32 %v2102_v29 }
 0x619   :  { %v2665_v63 = vpop.eup %2664 }
 0x61a   :  { %v2132_v19 = vperm.slane %v2665_v63, %v3096_v32  ;;  %v2136_v30 = vperm.slane %v2665_v63, %v3098_v33  ;;  %v2140_v21 = vperm.slane %v2665_v63, %v3100_v34 }
 0x61c   :  { %v2180_v37 = vmul.f32 %v3710_v38, %v2132_v19  ;;  %v2181_v51 = vmul.f32 %v3712_v7, %v2136_v30  ;;  %v2182_v55 = vmul.f32 %v3715_v53, %v2140_v21 }
 0x61e   :  { %2233 = vst [vmem:[#allocation1] ss:$4 sm:$0xff] %v2180_v37 }
 0x61f   :  { %2235 = vst [vmem:[#allocation1 + $0x1] ss:$4 sm:$0xff] %v2181_v51 }
 0x620   :  { %2237 = vst [vmem:[#allocation1 + $0x2] ss:$4 sm:$0xff] %v2182_v55 }
 0x627   :  { %v2238_v56 = vld.sshfl [vmem:[#allocation1] sm:$0xff pattern:$0x73625140] }
 0x628   :  { %v2105_v22 = vpop.xlane.xlu2 %2104  ;;  %2239 = vst [vmem:[#allocation1] ss:$4 sm:$0xff] %v3122_v58 }
 0x629   :  { %2666 = vrcp.f32 %v2105_v22  ;;  %2241 = vst [vmem:[#allocation1 + $0x1] ss:$4 sm:$0xff] %v3128_v59  ;;  %v2722_v22 = vmov 1983009808  }
 0x62a   :  { %2243 = vst [vmem:[#allocation1 + $0x2] ss:$4 sm:$0xff] %v3133_v39 }
 0x62f   :  { %v2667_v31 = vpop.eup %2666 }
 0x630   :  { %v2144_v40 = vperm.slane %v2667_v31, %v3096_v32  ;;  %v2148_v38 = vperm.slane %v2667_v31, %v3098_v33  ;;  %v2152_v7 = vperm.slane %v2667_v31, %v3100_v34  ;;  %v2400_v31 = vunpack.c.l.s4 %v2722_v22  ;;  %v2603_v22 = vld [vmem:[%s3862_s1 + $0x168] ss:$0 sm:$0xff] }
 0x631   :  { %v2244_v53 = vld.sshfl [vmem:[#allocation1] sm:$0xff pattern:$0x73625140] }
 0x632   :  { %v2183_v54 = vmul.f32 %v3726_v5, %v2144_v40  ;;  %v2184_v49 = vmul.f32 %v3728_v11, %v2148_v38  ;;  %v2185_v1 = vmul.f32 %v3731_v45, %v2152_v7  ;;  %2245 = vrot.lane.b32.xlu1 %v2244_v53, %s2720_s30 }
 0x634   :  { %2274 = vst [vmem:[#allocation1] ss:$4 sm:$0xff] %v2183_v54 }
 0x635   :  { %2276 = vst [vmem:[#allocation1 + $0x1] ss:$4 sm:$0xff] %v2184_v49  ;;  %v2401_v49 = vunpack.c.0.s8 %v2400_v31 }
 0x636   :  { %2278 = vst [vmem:[#allocation1 + $0x2] ss:$4 sm:$0xff] %v2185_v1 }
 0x63d   :  { %v2279_v58 = vld.sshfl [vmem:[#allocation1] sm:$0xff pattern:$0x73625140] }
 0x63e   :  { %2280 = vst [vmem:[#allocation1] ss:$4 sm:$0xff] %v3146_v0 }
 0x63f   :  { %2282 = vst [vmem:[#allocation1 + $0x1] ss:$4 sm:$0xff] %v3137_v61 }
 0x640   :  { %2284 = vst [vmem:[#allocation1 + $0x2] ss:$4 sm:$0xff] %v3156_v10 }
 0x647   :  { %v2285_v0 = vld.sshfl [vmem:[#allocation1] sm:$0xff pattern:$0x73625140] }
 0x64e   :  { %v2108_v59 = vpop.xlane.xlu0 %2107 }
 0x64f   :  { %2668 = vrcp.f32 %v2108_v59 }
 0x655   :  { %v2669_v39 = vpop.eup %2668 }
 0x656   :  { %v2156_v44 = vperm.slane %v2669_v39, %v3096_v32  ;;  %v2160_v4 = vperm.slane %v2669_v39, %v3098_v33  ;;  %v2164_v3 = vperm.slane %v2669_v39, %v3100_v34 }
 0x658   :  { %v2186_v43 = vmul.f32 %v3742_v50, %v2156_v44  ;;  %v2187_v5 = vmul.f32 %v3744_v36, %v2160_v4  ;;  %v2188_v11 = vmul.f32 %v3747_v16, %v2164_v3  ;;  %v2723_v3 = vmov 1934713408  }
 0x65a   :  { %2315 = vst [vmem:[#allocation1] ss:$4 sm:$0xff] %v2186_v43  ;;  %v2424_v43 = vunpack.c.l.s4 %v2723_v3 }
 0x65b   :  { %2317 = vst [vmem:[#allocation1 + $0x1] ss:$4 sm:$0xff] %v2187_v5 }
 0x65c   :  { %2319 = vst [vmem:[#allocation1 + $0x2] ss:$4 sm:$0xff] %v2188_v11 }
 0x663   :  { %v2320_v61 = vld.sshfl [vmem:[#allocation1] sm:$0xff pattern:$0x73625140] }
 0x664   :  { %2321 = vst [vmem:[#allocation1] ss:$4 sm:$0xff] %v3160_v12 }
 0x665   :  { %2323 = vst [vmem:[#allocation1 + $0x1] ss:$4 sm:$0xff] %v3203_v24  ;;  %v3800_v24 = vpop.f32.mrf.mxu3 }
 0x666   :  { %2325 = vst [vmem:[#allocation1 + $0x2] ss:$4 sm:$0xff] %v3206_v25  ;;  %v1514_v18 = vmul.f32 1.442695, %v3800_v24  ;;  %vm1510_vm10 = vcmp.gt.f32.partialorder %v3800_v24, 0.0 }
 0x66a   :  { %v2205_v32 = vpop.permute.xlu2 %2204 }
 0x66b   :  { %2542 = vmatpush.msk.msrb.mxu2 %vm1370_vm3, %v2205_v32 }
 0x66c   :  { %2543 = vmatmul.msk.f32.vlgmr.msrb.gmra.mxu2 %vm1367_vm4, %v2197_v26 }
 0x66d   :  { %v2326_v33 = vld.sshfl [vmem:[#allocation1] sm:$0xff pattern:$0x73625140]  ;;  %v1429_v25 = vpop.f32.mrf.mxu3 }
 0x66e   :  { %2327 = vrot.lane.b32.xlu0 %v2326_v33, %s2720_s30  ;;  %v1516_v17 = vmul.f32 1.442695, %v1429_v25  ;;  %vm1511_vm7 = vcmp.gt.f32.partialorder %v1429_v25, 0.0 }
 0x675   :  { %v1507_v45 = vpop.f32.mrf.mxu3 }
 0x676   :  { %2286 = vrot.lane.b32.xlu0 %v2285_v0, %s2720_s30  ;;  %v1520_v13 = vmul.f32 1.442695, %v1507_v45  ;;  %vm1513_vm8 = vcmp.gt.f32.partialorder %v1507_v45, 0.0 }
 0x6a4   :  { %v2246_v34 = vpop.permute.xlu1 %2245 }
 0x6a5   :  { %2544 = vmatpush.msk.msrb.mxu3 %vm1370_vm3, %v2246_v34 }
 0x6a6   :  { %2545 = vmatmul.msk.f32.vlgmr.msrb.gmra.mxu3 %vm1367_vm4, %v2238_v56 }
 0x6e0   :  { %v2328_v10 = vpop.permute.xlu0 %2327 }
 0x6e1   :  { %2548 = vmatpush.msk.msra.mxu3 %vm1370_vm3, %v2328_v10 }
 0x6e2   :  { %2549 = vmatmul.msk.f32.vlgmr.msra.gmra.mxu3 %vm1367_vm4, %v2320_v61 }
 0x6e8   :  { %v2287_v12 = vpop.permute.xlu0 %2286 }
 0x6e9   :  { %2546 = vmatpush.msk.msra.mxu2 %vm1370_vm3, %v2287_v12  ;;  %v2425_v12 = vunpack.c.0.s8 %v2424_v43 }
 0x6ea   :  { %2547 = vmatmul.msk.f32.vlgmr.msra.gmra.mxu2 %vm1367_vm4, %v2279_v58  ;;  %vm2389_vm4 = vcmask 64512  }
 0x6ef   :  { %v2227_v57 = vpop.f32.mrf.mxu2 }
 0x6f0   :  { %v2357_v46 = vmul.f32 1.442695, %v2227_v57  ;;  %vm2353_vm5 = vcmp.gt.f32.partialorder %v2227_v57, 0.0 }
 0x729   :  { %v2268_v15 = vpop.f32.mrf.mxu3 }
 0x72a   :  { %v2359_v6 = vmul.f32 1.442695, %v2268_v15  ;;  %vm2354_vm1 = vcmp.gt.f32.partialorder %v2268_v15, 0.0 }
 0x72c   :  { %2670 = vpow2.f32 %v2359_v6 }
 0x732   :  { %v2671_v41 = vpop.eup %2670 }
 0x733   :  { %v2551_v14 = vadd.f32 -1.0, %v2671_v41 }
 0x735   :  { %v2370_v42 = vsel %vm2354_vm1, %v2268_v15, %v2551_v14  ;;  %vm2512_vm1 = vcmask 125952  }
 0x736   :  { %2379 = vrot.lane.b32.xlu2 %v2370_v42, %s2721_s3 }
 0x765   :  { %v2350_v8 = vpop.f32.mrf.mxu3 }
 0x766   :  { %v2363_v2 = vmul.f32 1.442695, %v2350_v8  ;;  %vm2356_vm2 = vcmp.gt.f32.partialorder %v2350_v8, 0.0 }
 0x768   :  { %2672 = vpow2.f32 %v2363_v2 }
 0x769   :  { %2674 = vpow2.f32 %v2357_v46 }
 0x76d   :  { %v2309_v60 = vpop.f32.mrf.mxu2 }
 0x76e   :  { %v2673_v62 = vpop.eup %2672  ;;  %v2361_v50 = vmul.f32 1.442695, %v2309_v60  ;;  %vm2355_vm3 = vcmp.gt.f32.partialorder %v2309_v60, 0.0 }
 0x76f   :  { %v2553_v36 = vadd.f32 -1.0, %v2673_v62  ;;  %v2675_v27 = vpop.eup %2674 }
 0x770   :  { %2676 = vpow2.f32 %v2361_v50  ;;  %v2550_v9 = vadd.f32 -1.0, %v2675_v27  ;;  %v2483_v27 = vld [vmem:[%s3862_s1 + $0x158] sm:$0xff] }
 0x771   :  { %v2372_v16 = vsel %vm2356_vm2, %v2350_v8, %v2553_v36  ;;  %2678 = vpow2.f32 %v1516_v17  ;;  %v2477_v17 = vld [vmem:[%s3862_s1 + $0x128] sm:$0xff] }
 0x772   :  { %2383 = vrot.lane.b32.xlu1 %v2372_v16, %s2721_s3  ;;  %v2369_v20 = vsel %vm2353_vm5, %v2227_v57, %v2550_v9  ;;  %2680 = vpow2.f32 %v1520_v13  ;;  %v2484_v16 = vld [vmem:[%s3862_s1 + $0x160] sm:$0xff]  ;;  %v2482_v9 = vld [vmem:[%s3862_s1 + $0x150] sm:$0xff] }
 0x773   :  { %2682 = vpow2.f32 %v1514_v18  ;;  %2495 = vmatpush.msrb.mxu2 %v2484_v16  ;;  %v2476_v13 = vld [vmem:[%s3862_s1 + $0x120] sm:$0xff]  ;;  %v2475_v18 = vld [vmem:[%s3862_s1 + $0x118] sm:$0xff] }
 0x774   :  { %2684 = vpow2.f32 %v1518_v47  ;;  %v2474_v47 = vld [vmem:[%s3862_s1 + $0x110] sm:$0xff] }
 0x775   :  { %2496 = vmatpush.msrb.mxu2 %v2483_v27 }
 0x776   :  { %v2677_v52 = vpop.eup %2676 }
 0x777   :  { %v2552_v48 = vadd.f32 -1.0, %v2677_v52  ;;  %v2679_v26 = vpop.eup %2678  ;;  %v2481_v52 = vld [vmem:[%s3862_s1 + $0x148] sm:$0xff]  ;;  %2497 = vmatpush.msrb.mxu2 %v2482_v9 }
 0x778   :  { %v2681_v35 = vpop.eup %2680  ;;  %v2539_v29 = vadd.f32 -1.0, %v2679_v26  ;;  %v2473_v26 = vld [vmem:[%s3862_s1 + $0x108] sm:$0xff] }
 0x779   :  { %v2371_v23 = vsel %vm2355_vm3, %v2309_v60, %v2552_v48  ;;  %v2541_v63 = vadd.f32 -1.0, %v2681_v35  ;;  %v2683_v30 = vpop.eup %2682  ;;  %v2480_v48 = vld [vmem:[%s3862_s1 + $0x140] sm:$0xff]  ;;  %2498 = vmatpush.msrb.mxu2 %v2481_v52 }
 0x77a   :  { %2377 = vrot.lane.b32.xlu1 %v2369_v20, %s2721_s3  ;;  %2381 = vrot.lane.b32.xlu0 %v2371_v23, %s2721_s3  ;;  %v1527_v21 = vsel %vm1511_vm7, %v1429_v25, %v2539_v29  ;;  %v2685_v55 = vpop.eup %2684  ;;  %v2538_v7 = vadd.f32 -1.0, %v2683_v30  ;;  %v2479_v20 = vld [vmem:[%s3862_s1 + $0x138] sm:$0xff]  ;;  %v2478_v23 = vld [vmem:[%s3862_s1 + $0x130] sm:$0xff] }
 0x77b   :  { %v1529_v37 = vsel %vm1513_vm8, %v1507_v45, %v2541_v63  ;;  %v2540_v53 = vadd.f32 -1.0, %v2685_v55  ;;  %2499 = vmatpush.msrb.mxu2 %v2480_v48 }
 0x77c   :  { %v1526_v59 = vsel %vm1510_vm10, %v3800_v24, %v2538_v7 }
 0x77d   :  { %v1528_v39 = vsel %vm1512_vm11, %v1468_v28, %v2540_v53  ;;  %2500 = vmatpush.msrb.mxu2 %v2479_v20 }
 0x77f   :  { %2501 = vmatpush.msrb.mxu2 %v2478_v23 }
 0x781   :  { %2502 = vmatpush.msrb.mxu2 %v2477_v17 }
 0x783   :  { %2503 = vmatpush.msrb.mxu2 %v2476_v13 }
 0x785   :  { %2504 = vmatpush.msrb.mxu2 %v2475_v18 }
 0x787   :  { %2505 = vmatpush.msrb.mxu2 %v2474_v47 }
 0x789   :  { %2506 = vmatpush.msrb.mxu2 %v2473_v26 }
 0x790   :  { %v2380_v19 = vpop.permute.xlu2 %2379 }
 0x791   :  { %v2391_v56 = vsel %vm2389_vm4, %v1527_v21, %v2380_v19 }
 0x792   :  { %v2409_v54 = vrot.slane %v2391_v56, 4 }
 0x7e4   :  { %v2384_v51 = vpop.permute.xlu1 %2383 }
 0x7e5   :  { %v2393_v40 = vsel %vm2389_vm4, %v1529_v37, %v2384_v51 }
 0x7e6   :  { %v2407_v38 = vrot.slane %v2393_v40, 4  ;;  %v2410_v58 = vsel %vm2395_vm9, %v2393_v40, %v2409_v54 }
 0x7e7   :  { %v2418_v11 = vperm.slane %v2410_v58, %v2401_v49 }
 0x7e8   :  { %v2408_v1 = vsel %vm2395_vm9, %v2407_v38, %v2391_v56 }
 0x7e9   :  { %v2414_v5 = vperm.slane %v2408_v1, %v2401_v49  ;;  %v2431_v24 = vrot.slane %v2418_v11, 4 }
 0x7eb   :  { %v2419_v25 = vrot.slane %v2414_v5, 4 }
 0x7ec   :  { %v2378_v44 = vpop.permute.xlu1 %2377  ;;  %v2382_v4 = vpop.permute.xlu0 %2381 }
 0x7ed   :  { %v2390_v0 = vsel %vm2389_vm4, %v1526_v59, %v2378_v44  ;;  %v2392_v61 = vsel %vm2389_vm4, %v1528_v39, %v2382_v4 }
 0x7ee   :  { %v2397_v32 = vrot.slane %v2390_v0, 4  ;;  %v2394_v33 = vrot.slane %v2392_v61, 4 }
 0x7f0   :  { %v2396_v34 = vsel %vm2395_vm9, %v2394_v33, %v2390_v0  ;;  %v2398_v10 = vsel %vm2395_vm9, %v2392_v61, %v2397_v32 }
 0x7f1   :  { %v2402_v45 = vperm.slane %v2396_v34, %v2401_v49  ;;  %v2406_v15 = vperm.slane %v2398_v10, %v2401_v49 }
 0x7f3   :  { %v2421_v6 = vrot.slane %v2402_v45, 4  ;;  %v2420_v41 = vsel %vm2395_vm9, %v2419_v25, %v2402_v45  ;;  %v2432_v14 = vsel %vm2395_vm9, %v2431_v24, %v2406_v15 }
 0x7f4   :  { %v2426_v42 = vperm.slane %v2420_v41, %v2425_v12  ;;  %v2436_v2 = vperm.slane %v2432_v14, %v2425_v12 }
 0x7f5   :  { %v2422_v28 = vsel %vm2395_vm9, %v2414_v5, %v2421_v6 }
 0x7f6   :  { %v2430_v57 = vperm.slane %v2422_v28, %v2425_v12  ;;  %v2437_v8 = vrot.slane %v2426_v42, 4  ;;  %v2441_v50 = vrot.slane %v2436_v2, 4 }
 0x7f8   :  { %2448 = vrot.lane.b32.xlu0 %v2430_v57, %s2724_s4  ;;  %v2438_v46 = vsel %vm2395_vm9, 0.0, %v2437_v8  ;;  %v2439_v60 = vrot.slane %v2430_v57, 4  ;;  %v2442_v36 = vsel %vm2395_vm9, 0.0, %v2441_v50 }
 0x7f9   :  { %2444 = vrot.lane.b32.xlu2 %v2438_v46, %s2725_s5 }
 0x7fa   :  { %v2440_v62 = vsel %vm2395_vm9, 0.0, %v2439_v60 }
 0x7fb   :  { %2452 = vrot.lane.b32.xlu1 %v2440_v62, %s2726_s6  ;;  %s2729_s6 = smov [#allocation2]  }
 0x800   :  { %2460 = vrot.lane.b32.xlu0 %v2442_v36, %s2727_s7  ;;  %s2519_s7 = sshll.u32 %s2729_s6, 4  ;;  %s2520_s7 = int_to_ptr.vmem [resolvable:$true] %s2519_s7 }
 0x801   :  { %2456 = vrot.lane.b32.xlu2 %v2436_v2, %s2728_s8 }
 0x853   :  { %v2445_v35 = vpop.permute.xlu2 %2444 }
 0x854   :  { %v2464_v63 = vsel %vm2463_vm12, %v2426_v42, %v2445_v35 }
 0x85b   :  { %v2457_v37 = vpop.permute.xlu2 %2456 }
 0x86a   :  { %v2449_v29 = vpop.permute.xlu0 %2448 }
 0x86b   :  { %v2466_v30 = vsel %vm2465_vm13, %v2464_v63, %v2449_v29 }
 0x86d   :  { %v2453_v19 = vpop.permute.xlu1 %2452 }
 0x86e   :  { %v2468_v21 = vsel %vm2467_vm6, %v2466_v30, %v2453_v19 }
 0x86f   :  { %v2470_v55 = vsel %vm2469_vm14, %v2468_v21, %v2457_v37 }
 0x872   :  { %v2461_v51 = vpop.permute.xlu0 %2460 }
 0x873   :  { %v2472_v56 = vsel %vm2471_vm15, %v2470_v55, %v2461_v51 }
 0x874   :  { %2554 = vmatmul.msk.f32.vlgmr.msrb.gmra.mxu2 %vm2487_vm0, %v2472_v56 }
 0x8f7   :  { %v2508_v31 = vpop.f32.mrf.mxu2 }
 0x8f8   :  { %v2509_v40 = vadd.f32 %v2603_v22, %v2508_v31 }
 0x8fa   :  { %v2511_v38 = vmax.f32 %v2509_v40, 0.0 }
 0x8fc   :  { %2513 = vst.msk [vmem:[#allocation2] sm:$0xf] %vm2512_vm1, %v2511_v38 }
 0x8fd   :  { %2524 = dma.vmem_to_hbm [thread:$0]  %s2520_s7, 64, %s2522_s10, [#allocation3]  }
 0x8fe   :  { %2710 = dma.done.wait [#allocation3], 64  }
 0x8ff   :  { %2711 = vsyncadd [#allocation3], 4294967232 }
 0x900   :  { %2529 = vsyncpa [#allocation3], 1 }

</bundles_post_ra>
